<compile_context>
chip_gen: v5e
topology: v5e:2x2
jax: 0.10.0
libtpu: 0.0.40
codegen_flags: <defaults>
</compile_context>

<pallas_src>
import jax
import jax.numpy as jnp
from jax.experimental import pallas as pl
from jax.experimental.pallas import tpu as pltpu

EPS = 1e-5


# --------------------------------------------------------------------------
# in-kernel helpers
# --------------------------------------------------------------------------
def _conv3x1(a, w_ref, nb, seq_len):
    """Conv1d(k=3, stride=1, pad=1) on a (nb*seq_len, Cin) bf16 activation matrix.

    w_ref holds the three taps as (3, Cin, Cout) (pre-transposed, bf16).  Each
    tap is a full MXU matmul on the *unshifted* rows; the +/-1 tap shifts are
    applied to the f32 results with XLU rolls along the row (sublane) axis,
    masking rows that would wrap across the zero padding / batch boundaries.
    """
    rows = a.shape[0]
    cout = w_ref.shape[2]

    # centre tap seeds the accumulator (no zeros materialisation)
    acc = jnp.dot(a, w_ref[1], preferred_element_type=jnp.float32)
    z_lo = jnp.dot(a, w_ref[0], preferred_element_type=jnp.float32)
    z_hi = jnp.dot(a, w_ref[2], preferred_element_type=jnp.float32)

    # position l within each length-L segment: row r = n*L + l  ->  l
    lpos = jax.lax.broadcasted_iota(
        jnp.int32, (nb, seq_len, cout), 1).reshape(rows, cout)

    # out[l] += z_lo[l-1]   (zero padding at l == 0)
    acc = acc + jnp.where(lpos == 0, 0.0, pltpu.roll(z_lo, shift=1, axis=0))
    # out[l] += z_hi[l+1]   (zero padding at l == L-1);  shift=rows-1 == -1
    acc = acc + jnp.where(lpos == seq_len - 1, 0.0,
                          pltpu.roll(z_hi, shift=rows - 1, axis=0))
    return acc


def _store_stats(st_ref, h):
    """Per-channel single-pass BN partials for this tile: sum and sum of squares."""
    st_ref[0, 0:1, :] = jnp.sum(h, axis=0, keepdims=True)
    st_ref[0, 1:2, :] = jnp.sum(h * h, axis=0, keepdims=True)


# --------------------------------------------------------------------------
# kernels (one grid step == one batch tile of shape (nb, L, C))
# --------------------------------------------------------------------------
def _conv1_stats_kernel(x_ref, w1_ref, h1_ref, st_ref):
    nb, seq_len, cin = x_ref.shape
    rows = nb * seq_len
    x2 = x_ref[...].reshape(rows, cin).astype(jnp.bfloat16)   # bf16 MXU operand
    h = _conv3x1(x2, w1_ref, nb, seq_len)                     # (rows, P) f32
    p = h.shape[1]
    h1_ref[...] = h.reshape(nb, seq_len, p).astype(h1_ref.dtype)
    _store_stats(st_ref, h)


def _bn1_conv2_stats_kernel(h1_ref, s1_ref, t1_ref, w2_ref, h2_ref, st_ref):
    nb, seq_len, p = h1_ref.shape
    rows = nb * seq_len
    a = h1_ref[...].astype(jnp.float32).reshape(rows, p)
    a = jnp.maximum(a * s1_ref[...] + t1_ref[...], 0.0)       # fused BN1 + ReLU (f32)
    h = _conv3x1(a.astype(jnp.bfloat16), w2_ref, nb, seq_len)
    h2_ref[...] = h.reshape(nb, seq_len, p).astype(h2_ref.dtype)
    _store_stats(st_ref, h)


def _bn2_residual_kernel(h2_ref, x_ref, s2_ref, t2_ref, o_ref):
    nb, seq_len, p = h2_ref.shape
    rows = nb * seq_len
    y = h2_ref[...].astype(jnp.float32).reshape(rows, p)
    y = y * s2_ref[...] + t2_ref[...]                          # fused BN2 (f32)
    y = y + x_ref[...].reshape(rows, p)                        # identity residual
    o_ref[...] = jnp.maximum(y, 0.0).reshape(nb, seq_len, p).astype(o_ref.dtype)


# --------------------------------------------------------------------------
# wrapper
# --------------------------------------------------------------------------
def _fold_bn(partial_stats, gamma, beta, count):
    """Reduce per-tile (sum, sum_sq) partials -> per-channel (scale, bias)."""
    s = jnp.sum(partial_stats, axis=0)                     # (2, C)
    mean = s[0] / count
    var = jnp.maximum(s[1] / count - mean * mean, 0.0)     # biased variance
    scale = gamma * jax.lax.rsqrt(var + EPS)
    bias = beta - mean * scale
    return (scale.reshape(1, -1).astype(jnp.float32),
            bias.reshape(1, -1).astype(jnp.float32))


def basic_block_forward(x_ncl, params, *, batch_tile=None):
    """x_ncl: (N, C, L) float32 with C == planes.  Returns (N, C, L) float32."""
    w1, g1, b1, w2, g2, b2 = params
    n, cin, seq_len = x_ncl.shape
    p = w1.shape[0]
    assert w1.shape == (p, cin, 3) and w2.shape == (p, p, 3)
    assert cin == p, "identity residual (downsample=None) requires inplanes == planes"
    assert seq_len % 8 == 0, "L must be a multiple of 8 (sublane tiling)"

    nb = batch_tile if batch_tile is not None else (2 if n % 2 == 0 else 1)
    assert n % nb == 0, "batch_tile must divide N"
    grid = (n // nb,)
    n_rows = n * seq_len

    # ---- layout glue (plain JAX, runs once, outside the kernels) ----
    x_nlc = jnp.transpose(x_ncl, (0, 2, 1)).astype(jnp.float32)   # (N, L, C)
    w1_t = jnp.transpose(w1, (2, 1, 0)).astype(jnp.bfloat16)      # (3, Cin, P)
    w2_t = jnp.transpose(w2, (2, 1, 0)).astype(jnp.bfloat16)      # (3, P,  P)

    cparams = pltpu.CompilerParams(
        dimension_semantics=("parallel",),      # batch tiles are independent
        vmem_limit_bytes=32 * 1024 * 1024,      # explicit; safe on v7x (64 MiB VMEM)
    )

    act_spec = pl.BlockSpec((nb, seq_len, p), lambda i: (i, 0, 0))
    w_spec = pl.BlockSpec((3, p, p), lambda i: (0, 0, 0))
    vec_spec = pl.BlockSpec((1, p), lambda i: (0, 0))
    st_spec = pl.BlockSpec((1, 2, p), lambda i: (i, 0, 0))
    act_shape = jax.ShapeDtypeStruct((n, seq_len, p), jnp.float32)
    st_shape = jax.ShapeDtypeStruct((grid[0], 2, p), jnp.float32)

    # ---- pass 1: conv1 + BN1 partial stats ----
    h1, st1 = pl.pallas_call(
        _conv1_stats_kernel,
        grid=grid,
        in_specs=[act_spec, w_spec],
        out_specs=(act_spec, st_spec),
        out_shape=(act_shape, st_shape),
        compiler_params=cparams,
    )(x_nlc, w1_t)
    s1, t1 = _fold_bn(st1, g1, b1, n_rows)

    # ---- pass 2: BN1 + ReLU + conv2 + BN2 partial stats ----
    h2, st2 = pl.pallas_call(
        _bn1_conv2_stats_kernel,
        grid=grid,
        in_specs=[act_spec, vec_spec, vec_spec, w_spec],
        out_specs=(act_spec, st_spec),
        out_shape=(act_shape, st_shape),
        compiler_params=cparams,
    )(h1, s1, t1, w2_t)
    s2, t2 = _fold_bn(st2, g2, b2, n_rows)

    # ---- pass 3: BN2 + identity residual + ReLU ----
    out_nlc = pl.pallas_call(
        _bn2_residual_kernel,
        grid=grid,
        in_specs=[act_spec, act_spec, vec_spec, vec_spec],
        out_specs=act_spec,
        out_shape=act_shape,
        compiler_params=cparams,
    )(h2, x_nlc, s2, t2)

    return jnp.transpose(out_nlc, (0, 2, 1))                 # back to NCL


# --------------------------------------------------------------------------
# plain-JAX reference + test
# --------------------------------------------------------------------------
def reference_forward(x, params):
    """BasicBlock.forward with training-mode BatchNorm1d.  Conv operands are
    cast to bf16 (f32 accumulation) to mirror the kernel's bf16 MXU operands;
    all other math is f32."""
    w1, g1, b1, w2, g2, b2 = params

    def conv3(y, w):
        return jax.lax.conv_general_dilated(
            y.astype(jnp.bfloat16), w.astype(jnp.bfloat16),
            window_strides=(1,), padding=[(1, 1)],
            dimension_numbers=("NCH", "OIH", "NCH"),
            preferred_element_type=jnp.float32)

    def bn(y, g, b):
        mean = jnp.mean(y, axis=(0, 2), keepdims=True)
        var = jnp.mean((y - mean) ** 2, axis=(0, 2), keepdims=True)
        return ((y - mean) * jax.lax.rsqrt(var + EPS) * g.reshape(1, -1, 1)
                + b.reshape(1, -1, 1))

    h = jax.nn.relu(bn(conv3(x, w1), g1, b1))
    h = bn(conv3(h, w2), g2, b2)
    return jax.nn.relu(h + x)


def make_params(key, inplanes, planes):
    ks = jax.random.split(key, 4)
    w1 = 0.1 * jax.random.normal(ks[0], (planes, inplanes, 3), jnp.float32)  # conv3x3 #1
    w2 = 0.1 * jax.random.normal(ks[1], (planes, planes, 3), jnp.float32)    # conv3x3 #2
    g1 = 1.0 + 0.1 * jax.random.normal(ks[2], (planes,), jnp.float32)
    b1 = 0.1 * jax.random.normal(ks[3], (planes,), jnp.float32)
    g2 = jnp.ones((planes,), jnp.float32)
    b2 = jnp.zeros((planes,), jnp.float32)
    return (w1, g1, b1, w2, g2, b2)


if __name__ == "__main__":
    key = jax.random.PRNGKey(0)
    planes = 128                      # lane-dense channel dim (multiple of 128)
    inplanes = planes                 # BasicBlock identity path (expansion = 1)
    N, L = 8, 128
    kx, kp = jax.random.split(key)
    x = jax.random.normal(kx, (N, inplanes, L), jnp.float32)   # PyTorch NCL input
    params = make_params(kp, inplanes, planes)

    fwd = jax.jit(basic_block_forward, static_argnames=("batch_tile",))
    out = jax.block_until_ready(fwd(x, params, batch_tile=2))
    ref = jax.block_until_ready(reference_forward(x, params))

    assert out.shape == (N, inplanes, L)
    max_diff = float(jnp.max(jnp.abs(out - ref)))
    assert jnp.allclose(out, ref, atol=1e-2, rtol=1e-2), \
        f"mismatch: max abs diff {max_diff}"

    print("KERNEL_OK")
</pallas_src>

<mosaic_0001>
module attributes {stable_mosaic.version = 11 : i64} {
  func.func @_conv1_stats_kernel(%arg0: i32, %arg1: memref<2x128x128xf32, #tpu.memory_space<vmem>>, %arg2: memref<3x128x128xbf16, #tpu.memory_space<vmem>>, %arg3: memref<2x128x128xf32, #tpu.memory_space<vmem>>, %arg4: memref<1x2x128xf32, #tpu.memory_space<vmem>>) attributes {dimension_semantics = [#tpu.dimension_semantics<parallel>], iteration_bounds = array<i64: 4>, scalar_prefetch = 0 : i64, scratch_operands = 0 : i64, tpu.core_type = #tpu.core_type<tc>, window_params = [{transform_indices = @transform_0, window_bounds = array<i64: 2, 128, 128>}, {pipeline_mode = #tpu.pipeline_mode<synchronous>, transform_indices = @transform_1, window_bounds = array<i64: 3, 128, 128>}, {transform_indices = @transform_2, window_bounds = array<i64: 2, 128, 128>}, {transform_indices = @transform_3, window_bounds = array<i64: 1, 2, 128>}]} {
    %c0 = arith.constant 0 : index
    %c0_0 = arith.constant 0 : index
    %c0_1 = arith.constant 0 : index
    %0 = vector.load %arg1[%c0, %c0_0, %c0_1] : memref<2x128x128xf32, #tpu.memory_space<vmem>>, vector<2x128x128xf32>
    %1 = vector.shape_cast %0 : vector<2x128x128xf32> to vector<256x128xf32>
    %2 = arith.truncf %1 : vector<256x128xf32> to vector<256x128xbf16>
    %c1 = arith.constant 1 : index
    %c0_2 = arith.constant 0 : index
    %c0_3 = arith.constant 0 : index
    %3 = vector.load %arg2[%c1, %c0_2, %c0_3] : memref<3x128x128xbf16, #tpu.memory_space<vmem>>, vector<1x128x128xbf16>
    %4 = vector.shape_cast %3 : vector<1x128x128xbf16> to vector<128x128xbf16>
    %cst = arith.constant dense<0.000000e+00> : vector<256x128xf32>
    %5 = tpu.matmul %2, %4, %cst {dimension_numbers = #tpu.dot_dimension_numbers<[1], [0], [0], [1], [0, 0, 1, 1], [], []>} : vector<256x128xbf16>, vector<128x128xbf16>, vector<256x128xf32> -> vector<256x128xf32>
    %c0_4 = arith.constant 0 : index
    %c0_5 = arith.constant 0 : index
    %c0_6 = arith.constant 0 : index
    %6 = vector.load %arg2[%c0_4, %c0_5, %c0_6] : memref<3x128x128xbf16, #tpu.memory_space<vmem>>, vector<1x128x128xbf16>
    %7 = vector.shape_cast %6 : vector<1x128x128xbf16> to vector<128x128xbf16>
    %cst_7 = arith.constant dense<0.000000e+00> : vector<256x128xf32>
    %8 = tpu.matmul %2, %7, %cst_7 {dimension_numbers = #tpu.dot_dimension_numbers<[1], [0], [0], [1], [0, 0, 1, 1], [], []>} : vector<256x128xbf16>, vector<128x128xbf16>, vector<256x128xf32> -> vector<256x128xf32>
    %c2 = arith.constant 2 : index
    %c0_8 = arith.constant 0 : index
    %c0_9 = arith.constant 0 : index
    %9 = vector.load %arg2[%c2, %c0_8, %c0_9] : memref<3x128x128xbf16, #tpu.memory_space<vmem>>, vector<1x128x128xbf16>
    %10 = vector.shape_cast %9 : vector<1x128x128xbf16> to vector<128x128xbf16>
    %cst_10 = arith.constant dense<0.000000e+00> : vector<256x128xf32>
    %11 = tpu.matmul %2, %10, %cst_10 {dimension_numbers = #tpu.dot_dimension_numbers<[1], [0], [0], [1], [0, 0, 1, 1], [], []>} : vector<256x128xbf16>, vector<128x128xbf16>, vector<256x128xf32> -> vector<256x128xf32>
    %12 = tpu.iota {dimensions = array<i32: 1>} : vector<2x128x128xi32>
    %13 = vector.shape_cast %12 : vector<2x128x128xi32> to vector<256x128xi32>
    %c0_i32 = arith.constant 0 : i32
    %14 = vector.broadcast %c0_i32 : i32 to vector<256x128xi32>
    %15 = arith.cmpi eq, %13, %14 : vector<256x128xi32>
    %c1_i32 = arith.constant 1 : i32
    %16 = tpu.dynamic_rotate %8 by %c1_i32 dim 0 : vector<256x128xf32>, i32 -> vector<256x128xf32>
    %cst_11 = arith.constant 0.000000e+00 : f32
    %17 = vector.broadcast %cst_11 : f32 to vector<256x128xf32>
    %18 = arith.select %15, %17, %16 : vector<256x128xi1>, vector<256x128xf32>
    %19 = arith.addf %5, %18 : vector<256x128xf32>
    %c127_i32 = arith.constant 127 : i32
    %20 = vector.broadcast %c127_i32 : i32 to vector<256x128xi32>
    %21 = arith.cmpi eq, %13, %20 : vector<256x128xi32>
    %c255_i32 = arith.constant 255 : i32
    %22 = tpu.dynamic_rotate %11 by %c255_i32 dim 0 : vector<256x128xf32>, i32 -> vector<256x128xf32>
    %cst_12 = arith.constant 0.000000e+00 : f32
    %23 = vector.broadcast %cst_12 : f32 to vector<256x128xf32>
    %24 = arith.select %21, %23, %22 : vector<256x128xi1>, vector<256x128xf32>
    %25 = arith.addf %19, %24 : vector<256x128xf32>
    %26 = vector.shape_cast %25 : vector<256x128xf32> to vector<2x128x128xf32>
    %c0_13 = arith.constant 0 : index
    %c0_14 = arith.constant 0 : index
    %c0_15 = arith.constant 0 : index
    %27 = vector.load %arg3[%c0_13, %c0_14, %c0_15] : memref<2x128x128xf32, #tpu.memory_space<vmem>>, vector<2x128x128xf32>
    tpu.vector_store %arg3[%c0_13, %c0_14, %c0_15], %26 {strides = array<i32>} : memref<2x128x128xf32, #tpu.memory_space<vmem>>, vector<2x128x128xf32>,
    %cst_16 = arith.constant dense<0.000000e+00> : vector<128xf32>
    %28 = vector.multi_reduction <add>, %25, %cst_16 [0] : vector<256x128xf32> to vector<128xf32>
    %29 = vector.shape_cast %28 : vector<128xf32> to vector<1x128xf32>
    %c0_17 = arith.constant 0 : index
    %c0_18 = arith.constant 0 : index
    %c0_19 = arith.constant 0 : index
    %30 = vector.load %arg4[%c0_17, %c0_18, %c0_19] : memref<1x2x128xf32, #tpu.memory_space<vmem>>, vector<1x1x128xf32>
    %31 = vector.shape_cast %30 : vector<1x1x128xf32> to vector<1x128xf32>
    %32 = vector.shape_cast %29 : vector<1x128xf32> to vector<1x1x128xf32>
    tpu.vector_store %arg4[%c0_17, %c0_18, %c0_19], %32 {strides = array<i32>} : memref<1x2x128xf32, #tpu.memory_space<vmem>>, vector<1x1x128xf32>,
    %33 = arith.mulf %25, %25 : vector<256x128xf32>
    %cst_20 = arith.constant dense<0.000000e+00> : vector<128xf32>
    %34 = vector.multi_reduction <add>, %33, %cst_20 [0] : vector<256x128xf32> to vector<128xf32>
    %35 = vector.shape_cast %34 : vector<128xf32> to vector<1x128xf32>
    %c0_21 = arith.constant 0 : index
    %c1_22 = arith.constant 1 : index
    %c0_23 = arith.constant 0 : index
    %36 = vector.load %arg4[%c0_21, %c1_22, %c0_23] : memref<1x2x128xf32, #tpu.memory_space<vmem>>, vector<1x1x128xf32>
    %37 = vector.shape_cast %36 : vector<1x1x128xf32> to vector<1x128xf32>
    %38 = vector.shape_cast %35 : vector<1x128xf32> to vector<1x1x128xf32>
    tpu.vector_store %arg4[%c0_21, %c1_22, %c0_23], %38 {strides = array<i32>} : memref<1x2x128xf32, #tpu.memory_space<vmem>>, vector<1x1x128xf32>,
    return
  }
  func.func @transform_0(%arg0: i32) -> (i32, i32, i32) {
    %c0_i32 = arith.constant 0 : i32
    %c0_i32_0 = arith.constant 0 : i32
    %c0_i32_1 = arith.constant 0 : i32
    return %arg0, %c0_i32, %c0_i32_0 : i32, i32, i32
  }
  func.func @transform_1(%arg0: i32) -> (i32, i32, i32) {
    %c0_i32 = arith.constant 0 : i32
    %c0_i32_0 = arith.constant 0 : i32
    %c0_i32_1 = arith.constant 0 : i32
    %c0_i32_2 = arith.constant 0 : i32
    return %c0_i32, %c0_i32_0, %c0_i32_1 : i32, i32, i32
  }
  func.func @transform_2(%arg0: i32) -> (i32, i32, i32) {
    %c0_i32 = arith.constant 0 : i32
    %c0_i32_0 = arith.constant 0 : i32
    %c0_i32_1 = arith.constant 0 : i32
    return %arg0, %c0_i32, %c0_i32_0 : i32, i32, i32
  }
  func.func @transform_3(%arg0: i32) -> (i32, i32, i32) {
    %c0_i32 = arith.constant 0 : i32
    %c0_i32_0 = arith.constant 0 : i32
    %c0_i32_1 = arith.constant 0 : i32
    return %arg0, %c0_i32, %c0_i32_0 : i32, i32, i32
  }
}

module attributes {stable_mosaic.version = 11 : i64} {
  func.func @_bn1_conv2_stats_kernel(%arg0: i32, %arg1: memref<2x128x128xf32, #tpu.memory_space<vmem>>, %arg2: memref<1x128xf32, #tpu.memory_space<vmem>>, %arg3: memref<1x128xf32, #tpu.memory_space<vmem>>, %arg4: memref<3x128x128xbf16, #tpu.memory_space<vmem>>, %arg5: memref<2x128x128xf32, #tpu.memory_space<vmem>>, %arg6: memref<1x2x128xf32, #tpu.memory_space<vmem>>) attributes {dimension_semantics = [#tpu.dimension_semantics<parallel>], iteration_bounds = array<i64: 4>, scalar_prefetch = 0 : i64, scratch_operands = 0 : i64, tpu.core_type = #tpu.core_type<tc>, window_params = [{transform_indices = @transform_0, window_bounds = array<i64: 2, 128, 128>}, {pipeline_mode = #tpu.pipeline_mode<synchronous>, transform_indices = @transform_1, window_bounds = array<i64: 1, 128>}, {pipeline_mode = #tpu.pipeline_mode<synchronous>, transform_indices = @transform_2, window_bounds = array<i64: 1, 128>}, {pipeline_mode = #tpu.pipeline_mode<synchronous>, transform_indices = @transform_3, window_bounds = array<i64: 3, 128, 128>}, {transform_indices = @transform_4, window_bounds = array<i64: 2, 128, 128>}, {transform_indices = @transform_5, window_bounds = array<i64: 1, 2, 128>}]} {
    %c0 = arith.constant 0 : index
    %c0_0 = arith.constant 0 : index
    %c0_1 = arith.constant 0 : index
    %0 = vector.load %arg1[%c0, %c0_0, %c0_1] : memref<2x128x128xf32, #tpu.memory_space<vmem>>, vector<2x128x128xf32>
    %1 = vector.shape_cast %0 : vector<2x128x128xf32> to vector<256x128xf32>
    %c0_2 = arith.constant 0 : index
    %c0_3 = arith.constant 0 : index
    %2 = vector.load %arg2[%c0_2, %c0_3] : memref<1x128xf32, #tpu.memory_space<vmem>>, vector<1x128xf32>
    %3 = vector.broadcast %2 : vector<1x128xf32> to vector<256x128xf32>
    %4 = arith.mulf %1, %3 : vector<256x128xf32>
    %c0_4 = arith.constant 0 : index
    %c0_5 = arith.constant 0 : index
    %5 = vector.load %arg3[%c0_4, %c0_5] : memref<1x128xf32, #tpu.memory_space<vmem>>, vector<1x128xf32>
    %6 = vector.broadcast %5 : vector<1x128xf32> to vector<256x128xf32>
    %7 = arith.addf %4, %6 : vector<256x128xf32>
    %cst = arith.constant 0.000000e+00 : f32
    %8 = vector.broadcast %cst : f32 to vector<256x128xf32>
    %9 = arith.maximumf %7, %8 : vector<256x128xf32>
    %10 = arith.truncf %9 : vector<256x128xf32> to vector<256x128xbf16>
    %c1 = arith.constant 1 : index
    %c0_6 = arith.constant 0 : index
    %c0_7 = arith.constant 0 : index
    %11 = vector.load %arg4[%c1, %c0_6, %c0_7] : memref<3x128x128xbf16, #tpu.memory_space<vmem>>, vector<1x128x128xbf16>
    %12 = vector.shape_cast %11 : vector<1x128x128xbf16> to vector<128x128xbf16>
    %cst_8 = arith.constant dense<0.000000e+00> : vector<256x128xf32>
    %13 = tpu.matmul %10, %12, %cst_8 {dimension_numbers = #tpu.dot_dimension_numbers<[1], [0], [0], [1], [0, 0, 1, 1], [], []>} : vector<256x128xbf16>, vector<128x128xbf16>, vector<256x128xf32> -> vector<256x128xf32>
    %c0_9 = arith.constant 0 : index
    %c0_10 = arith.constant 0 : index
    %c0_11 = arith.constant 0 : index
    %14 = vector.load %arg4[%c0_9, %c0_10, %c0_11] : memref<3x128x128xbf16, #tpu.memory_space<vmem>>, vector<1x128x128xbf16>
    %15 = vector.shape_cast %14 : vector<1x128x128xbf16> to vector<128x128xbf16>
    %cst_12 = arith.constant dense<0.000000e+00> : vector<256x128xf32>
    %16 = tpu.matmul %10, %15, %cst_12 {dimension_numbers = #tpu.dot_dimension_numbers<[1], [0], [0], [1], [0, 0, 1, 1], [], []>} : vector<256x128xbf16>, vector<128x128xbf16>, vector<256x128xf32> -> vector<256x128xf32>
    %c2 = arith.constant 2 : index
    %c0_13 = arith.constant 0 : index
    %c0_14 = arith.constant 0 : index
    %17 = vector.load %arg4[%c2, %c0_13, %c0_14] : memref<3x128x128xbf16, #tpu.memory_space<vmem>>, vector<1x128x128xbf16>
    %18 = vector.shape_cast %17 : vector<1x128x128xbf16> to vector<128x128xbf16>
    %cst_15 = arith.constant dense<0.000000e+00> : vector<256x128xf32>
    %19 = tpu.matmul %10, %18, %cst_15 {dimension_numbers = #tpu.dot_dimension_numbers<[1], [0], [0], [1], [0, 0, 1, 1], [], []>} : vector<256x128xbf16>, vector<128x128xbf16>, vector<256x128xf32> -> vector<256x128xf32>
    %20 = tpu.iota {dimensions = array<i32: 1>} : vector<2x128x128xi32>
    %21 = vector.shape_cast %20 : vector<2x128x128xi32> to vector<256x128xi32>
    %c0_i32 = arith.constant 0 : i32
    %22 = vector.broadcast %c0_i32 : i32 to vector<256x128xi32>
    %23 = arith.cmpi eq, %21, %22 : vector<256x128xi32>
    %c1_i32 = arith.constant 1 : i32
    %24 = tpu.dynamic_rotate %16 by %c1_i32 dim 0 : vector<256x128xf32>, i32 -> vector<256x128xf32>
    %cst_16 = arith.constant 0.000000e+00 : f32
    %25 = vector.broadcast %cst_16 : f32 to vector<256x128xf32>
    %26 = arith.select %23, %25, %24 : vector<256x128xi1>, vector<256x128xf32>
    %27 = arith.addf %13, %26 : vector<256x128xf32>
    %c127_i32 = arith.constant 127 : i32
    %28 = vector.broadcast %c127_i32 : i32 to vector<256x128xi32>
    %29 = arith.cmpi eq, %21, %28 : vector<256x128xi32>
    %c255_i32 = arith.constant 255 : i32
    %30 = tpu.dynamic_rotate %19 by %c255_i32 dim 0 : vector<256x128xf32>, i32 -> vector<256x128xf32>
    %cst_17 = arith.constant 0.000000e+00 : f32
    %31 = vector.broadcast %cst_17 : f32 to vector<256x128xf32>
    %32 = arith.select %29, %31, %30 : vector<256x128xi1>, vector<256x128xf32>
    %33 = arith.addf %27, %32 : vector<256x128xf32>
    %34 = vector.shape_cast %33 : vector<256x128xf32> to vector<2x128x128xf32>
    %c0_18 = arith.constant 0 : index
    %c0_19 = arith.constant 0 : index
    %c0_20 = arith.constant 0 : index
    %35 = vector.load %arg5[%c0_18, %c0_19, %c0_20] : memref<2x128x128xf32, #tpu.memory_space<vmem>>, vector<2x128x128xf32>
    tpu.vector_store %arg5[%c0_18, %c0_19, %c0_20], %34 {strides = array<i32>} : memref<2x128x128xf32, #tpu.memory_space<vmem>>, vector<2x128x128xf32>,
    %cst_21 = arith.constant dense<0.000000e+00> : vector<128xf32>
    %36 = vector.multi_reduction <add>, %33, %cst_21 [0] : vector<256x128xf32> to vector<128xf32>
    %37 = vector.shape_cast %36 : vector<128xf32> to vector<1x128xf32>
    %c0_22 = arith.constant 0 : index
    %c0_23 = arith.constant 0 : index
    %c0_24 = arith.constant 0 : index
    %38 = vector.load %arg6[%c0_22, %c0_23, %c0_24] : memref<1x2x128xf32, #tpu.memory_space<vmem>>, vector<1x1x128xf32>
    %39 = vector.shape_cast %38 : vector<1x1x128xf32> to vector<1x128xf32>
    %40 = vector.shape_cast %37 : vector<1x128xf32> to vector<1x1x128xf32>
    tpu.vector_store %arg6[%c0_22, %c0_23, %c0_24], %40 {strides = array<i32>} : memref<1x2x128xf32, #tpu.memory_space<vmem>>, vector<1x1x128xf32>,
    %41 = arith.mulf %33, %33 : vector<256x128xf32>
    %cst_25 = arith.constant dense<0.000000e+00> : vector<128xf32>
    %42 = vector.multi_reduction <add>, %41, %cst_25 [0] : vector<256x128xf32> to vector<128xf32>
    %43 = vector.shape_cast %42 : vector<128xf32> to vector<1x128xf32>
    %c0_26 = arith.constant 0 : index
    %c1_27 = arith.constant 1 : index
    %c0_28 = arith.constant 0 : index
    %44 = vector.load %arg6[%c0_26, %c1_27, %c0_28] : memref<1x2x128xf32, #tpu.memory_space<vmem>>, vector<1x1x128xf32>
    %45 = vector.shape_cast %44 : vector<1x1x128xf32> to vector<1x128xf32>
    %46 = vector.shape_cast %43 : vector<1x128xf32> to vector<1x1x128xf32>
    tpu.vector_store %arg6[%c0_26, %c1_27, %c0_28], %46 {strides = array<i32>} : memref<1x2x128xf32, #tpu.memory_space<vmem>>, vector<1x1x128xf32>,
    return
  }
  func.func @transform_0(%arg0: i32) -> (i32, i32, i32) {
    %c0_i32 = arith.constant 0 : i32
    %c0_i32_0 = arith.constant 0 : i32
    %c0_i32_1 = arith.constant 0 : i32
    return %arg0, %c0_i32, %c0_i32_0 : i32, i32, i32
  }
  func.func @transform_1(%arg0: i32) -> (i32, i32) {
    %c0_i32 = arith.constant 0 : i32
    %c0_i32_0 = arith.constant 0 : i32
    %c0_i32_1 = arith.constant 0 : i32
    return %c0_i32, %c0_i32_0 : i32, i32
  }
  func.func @transform_2(%arg0: i32) -> (i32, i32) {
    %c0_i32 = arith.constant 0 : i32
    %c0_i32_0 = arith.constant 0 : i32
    %c0_i32_1 = arith.constant 0 : i32
    return %c0_i32, %c0_i32_0 : i32, i32
  }
  func.func @transform_3(%arg0: i32) -> (i32, i32, i32) {
    %c0_i32 = arith.constant 0 : i32
    %c0_i32_0 = arith.constant 0 : i32
    %c0_i32_1 = arith.constant 0 : i32
    %c0_i32_2 = arith.constant 0 : i32
    return %c0_i32, %c0_i32_0, %c0_i32_1 : i32, i32, i32
  }
  func.func @transform_4(%arg0: i32) -> (i32, i32, i32) {
    %c0_i32 = arith.constant 0 : i32
    %c0_i32_0 = arith.constant 0 : i32
    %c0_i32_1 = arith.constant 0 : i32
    return %arg0, %c0_i32, %c0_i32_0 : i32, i32, i32
  }
  func.func @transform_5(%arg0: i32) -> (i32, i32, i32) {
    %c0_i32 = arith.constant 0 : i32
    %c0_i32_0 = arith.constant 0 : i32
    %c0_i32_1 = arith.constant 0 : i32
    return %arg0, %c0_i32, %c0_i32_0 : i32, i32, i32
  }
}

module attributes {stable_mosaic.version = 11 : i64} {
  func.func @_bn2_residual_kernel(%arg0: i32, %arg1: memref<2x128x128xf32, #tpu.memory_space<vmem>>, %arg2: memref<2x128x128xf32, #tpu.memory_space<vmem>>, %arg3: memref<1x128xf32, #tpu.memory_space<vmem>>, %arg4: memref<1x128xf32, #tpu.memory_space<vmem>>, %arg5: memref<2x128x128xf32, #tpu.memory_space<vmem>>) attributes {dimension_semantics = [#tpu.dimension_semantics<parallel>], iteration_bounds = array<i64: 4>, scalar_prefetch = 0 : i64, scratch_operands = 0 : i64, tpu.core_type = #tpu.core_type<tc>, window_params = [{transform_indices = @transform_0, window_bounds = array<i64: 2, 128, 128>}, {transform_indices = @transform_1, window_bounds = array<i64: 2, 128, 128>}, {pipeline_mode = #tpu.pipeline_mode<synchronous>, transform_indices = @transform_2, window_bounds = array<i64: 1, 128>}, {pipeline_mode = #tpu.pipeline_mode<synchronous>, transform_indices = @transform_3, window_bounds = array<i64: 1, 128>}, {transform_indices = @transform_4, window_bounds = array<i64: 2, 128, 128>}]} {
    %c0 = arith.constant 0 : index
    %c0_0 = arith.constant 0 : index
    %c0_1 = arith.constant 0 : index
    %0 = vector.load %arg1[%c0, %c0_0, %c0_1] : memref<2x128x128xf32, #tpu.memory_space<vmem>>, vector<2x128x128xf32>
    %1 = vector.shape_cast %0 : vector<2x128x128xf32> to vector<256x128xf32>
    %c0_2 = arith.constant 0 : index
    %c0_3 = arith.constant 0 : index
    %2 = vector.load %arg3[%c0_2, %c0_3] : memref<1x128xf32, #tpu.memory_space<vmem>>, vector<1x128xf32>
    %3 = vector.broadcast %2 : vector<1x128xf32> to vector<256x128xf32>
    %4 = arith.mulf %1, %3 : vector<256x128xf32>
    %c0_4 = arith.constant 0 : index
    %c0_5 = arith.constant 0 : index
    %5 = vector.load %arg4[%c0_4, %c0_5] : memref<1x128xf32, #tpu.memory_space<vmem>>, vector<1x128xf32>
    %6 = vector.broadcast %5 : vector<1x128xf32> to vector<256x128xf32>
    %7 = arith.addf %4, %6 : vector<256x128xf32>
    %c0_6 = arith.constant 0 : index
    %c0_7 = arith.constant 0 : index
    %c0_8 = arith.constant 0 : index
    %8 = vector.load %arg2[%c0_6, %c0_7, %c0_8] : memref<2x128x128xf32, #tpu.memory_space<vmem>>, vector<2x128x128xf32>
    %9 = vector.shape_cast %8 : vector<2x128x128xf32> to vector<256x128xf32>
    %10 = arith.addf %7, %9 : vector<256x128xf32>
    %cst = arith.constant 0.000000e+00 : f32
    %11 = vector.broadcast %cst : f32 to vector<256x128xf32>
    %12 = arith.maximumf %10, %11 : vector<256x128xf32>
    %13 = vector.shape_cast %12 : vector<256x128xf32> to vector<2x128x128xf32>
    %c0_9 = arith.constant 0 : index
    %c0_10 = arith.constant 0 : index
    %c0_11 = arith.constant 0 : index
    %14 = vector.load %arg5[%c0_9, %c0_10, %c0_11] : memref<2x128x128xf32, #tpu.memory_space<vmem>>, vector<2x128x128xf32>
    tpu.vector_store %arg5[%c0_9, %c0_10, %c0_11], %13 {strides = array<i32>} : memref<2x128x128xf32, #tpu.memory_space<vmem>>, vector<2x128x128xf32>,
    return
  }
  func.func @transform_0(%arg0: i32) -> (i32, i32, i32) {
    %c0_i32 = arith.constant 0 : i32
    %c0_i32_0 = arith.constant 0 : i32
    %c0_i32_1 = arith.constant 0 : i32
    return %arg0, %c0_i32, %c0_i32_0 : i32, i32, i32
  }
  func.func @transform_1(%arg0: i32) -> (i32, i32, i32) {
    %c0_i32 = arith.constant 0 : i32
    %c0_i32_0 = arith.constant 0 : i32
    %c0_i32_1 = arith.constant 0 : i32
    return %arg0, %c0_i32, %c0_i32_0 : i32, i32, i32
  }
  func.func @transform_2(%arg0: i32) -> (i32, i32) {
    %c0_i32 = arith.constant 0 : i32
    %c0_i32_0 = arith.constant 0 : i32
    %c0_i32_1 = arith.constant 0 : i32
    return %c0_i32, %c0_i32_0 : i32, i32
  }
  func.func @transform_3(%arg0: i32) -> (i32, i32) {
    %c0_i32 = arith.constant 0 : i32
    %c0_i32_0 = arith.constant 0 : i32
    %c0_i32_1 = arith.constant 0 : i32
    return %c0_i32, %c0_i32_0 : i32, i32
  }
  func.func @transform_4(%arg0: i32) -> (i32, i32, i32) {
    %c0_i32 = arith.constant 0 : i32
    %c0_i32_0 = arith.constant 0 : i32
    %c0_i32_1 = arith.constant 0 : i32
    return %arg0, %c0_i32, %c0_i32_0 : i32, i32, i32
  }
}

</mosaic_0001>

<bundles_post_ra>
// kernel: basic_block_forward.5
= control target key start
LH: loop header
LB: loop body
LE: loop exit
PB: predicated region body
PF: predicated region fallthrough
CT: control target
= control target key end

     0   :  { %s595_s15 = smov 0   ;;  %s796_s0 = inlined_call_operand.vmem [shape: f32[8,128,128], index: 0, kind: input, shape index: {}]   ;;  %s797_s1 = inlined_call_operand.vmem [shape: f32[8,128,128], index: 1, kind: input, shape index: {}]   ;;  %s798_s2 = inlined_call_operand.vmem [shape: f32[1,128], index: 2, kind: input, shape index: {}]   ;;  %s799_s3 = inlined_call_operand.vmem [shape: f32[1,128], index: 3, kind: input, shape index: {}]   ;;  %s800_s4 = inlined_call_operand.vmem [shape: f32[8,128,128], index: 4, kind: output, shape index: {}]  }
   0x1 LB: > { %s533_s16 = sadd.s32 4294967295, %s568_s15   ;;  %p537_p0 = scmp.ge.s32.totalorder %s568_s15, 1  ;;  %s568_s15 = sphi %s595_s15, %s14_s15  }
   0x2   : > { %p176_p1 = scmp.lt.s32.totalorder %s568_s15, 5 }
   0x4   : > { %p177_p2 = pnand %p537_p0, %p176_p1 }
   0x5   : > { %s538_s17 = sshll.u32 (!%p177_p2), %s533_s16, 1 }
   0x6   : > { %180 = sbr.rel (%p177_p2) target bundleno = 55 (0x37), region = 36  ;;  %p211_p3 = scmp.lt.s32.totalorder (!%p177_p2), %s538_s17, 7 }
   0xb   : > { %s802_s17 = smov (!%p211_p3, %s538_s17), 7  ;;  %v606_v0 = vld [vmem:[%s798_s2] ss:$0 sm:$0xff] }
   0xc   : > { %s608_s20 = sshll.u32 %s802_s17, 7  ;;  %v625_v1 = vld [vmem:[%s799_s3] ss:$0 sm:$0xff] }
   0xd   : > { %s614_s23 = scalar_lea.vmem %s796_s0, %s608_s20  ;;  %s620_s26 = scalar_lea.vmem %s797_s1, %s608_s20 }
   0xe   : > { %v231_v2 = vld [vmem:[%s614_s23] sm:$0xff]  ;;  %v232_v3 = vld [vmem:[%s614_s23 + $0x8] sm:$0xff]  ;;  %v233_v7 = vld [vmem:[%s614_s23 + $0x10] sm:$0xff]  ;;  %s656_s5 = scalar_lea.vmem %s800_s4, %s608_s20 }
   0xf   : > { %v267_v4 = vmul.f32 %v606_v0, %v231_v2  ;;  %v335_v5 = vld [vmem:[%s620_s26] sm:$0xff]  ;;  %v268_v6 = vmul.f32 %v606_v0, %v232_v3  ;;  %v336_v8 = vld [vmem:[%s620_s26 + $0x8] sm:$0xff]  ;;  %v269_v9 = vmul.f32 %v606_v0, %v233_v7  ;;  %v234_v10 = vld [vmem:[%s614_s23 + $0x18] sm:$0xff] }
  0x10   : > { %v235_v11 = vld [vmem:[%s614_s23 + $0x20] sm:$0xff]  ;;  %v337_v14 = vld [vmem:[%s620_s26 + $0x10] sm:$0xff]  ;;  %v270_v15 = vmul.f32 %v606_v0, %v234_v10  ;;  %v338_v16 = vld [vmem:[%s620_s26 + $0x18] sm:$0xff] }
  0x11   : > { %v303_v12 = vadd.f32 %v625_v1, %v267_v4  ;;  %v304_v13 = vadd.f32 %v625_v1, %v268_v6  ;;  %v271_v17 = vmul.f32 %v606_v0, %v235_v11  ;;  %v236_v18 = vld [vmem:[%s614_s23 + $0x28] sm:$0xff]  ;;  %v305_v19 = vadd.f32 %v625_v1, %v269_v9  ;;  %v339_v20 = vld [vmem:[%s620_s26 + $0x20] sm:$0xff]  ;;  %v237_v22 = vld [vmem:[%s614_s23 + $0x30] sm:$0xff] }
  0x12   : > { %v272_v21 = vmul.f32 %v606_v0, %v236_v18  ;;  %v238_v23 = vld [vmem:[%s614_s23 + $0x38] sm:$0xff]  ;;  %v306_v26 = vadd.f32 %v625_v1, %v270_v15  ;;  %v340_v28 = vld [vmem:[%s620_s26 + $0x28] sm:$0xff]  ;;  %v273_v31 = vmul.f32 %v606_v0, %v237_v22  ;;  %v239_v33 = vld [vmem:[%s614_s23 + $0x40] sm:$0xff] }
  0x13   : > { %v367_v24 = vadd.f32 %v335_v5, %v303_v12  ;;  %v368_v25 = vadd.f32 %v336_v8, %v304_v13  ;;  %v307_v27 = vadd.f32 %v625_v1, %v271_v17  ;;  %v369_v29 = vadd.f32 %v337_v14, %v305_v19  ;;  %v240_v34 = vld [vmem:[%s614_s23 + $0x48] sm:$0xff]  ;;  %v341_v39 = vld [vmem:[%s620_s26 + $0x30] sm:$0xff]  ;;  %v342_v40 = vld [vmem:[%s620_s26 + $0x38] sm:$0xff] }
  0x14   : > { %v308_v30 = vadd.f32 %v625_v1, %v272_v21  ;;  %v274_v32 = vmul.f32 %v606_v0, %v238_v23  ;;  %v370_v37 = vadd.f32 %v338_v16, %v306_v26  ;;  %v241_v41 = vld [vmem:[%s614_s23 + $0x50] sm:$0xff]  ;;  %v309_v44 = vadd.f32 %v625_v1, %v273_v31  ;;  %v242_v46 = vld [vmem:[%s614_s23 + $0x58] sm:$0xff]  ;;  %v243_v47 = vld [vmem:[%s614_s23 + $0x60] sm:$0xff] }
  0x15   : > { %v399_v35 = vmax.f32 %v367_v24, 0.0  ;;  %v400_v36 = vmax.f32 %v368_v25, 0.0  ;;  %v371_v38 = vadd.f32 %v339_v20, %v307_v27  ;;  %v401_v42 = vmax.f32 %v369_v29, 0.0  ;;  %v244_v52 = vld [vmem:[%s614_s23 + $0x68] sm:$0xff]  ;;  %v343_v56 = vld [vmem:[%s620_s26 + $0x40] sm:$0xff]  ;;  %v345_v61 = vld [vmem:[%s620_s26 + $0x50] sm:$0xff] }
  0x16   : > { %v372_v43 = vadd.f32 %v340_v28, %v308_v30  ;;  %v310_v45 = vadd.f32 %v625_v1, %v274_v32  ;;  %v402_v48 = vmax.f32 %v370_v37, 0.0  ;;  %v275_v50 = vmul.f32 %v606_v0, %v239_v33  ;;  %v344_v57 = vld [vmem:[%s620_s26 + $0x48] sm:$0xff]  ;;  %v245_v2 = vld [vmem:[%s614_s23 + $0x70] sm:$0xff]  ;;  %v246_v3 = vld [vmem:[%s614_s23 + $0x78] sm:$0xff] }
  0x17   : > { %431 = vst [vmem:[%s656_s5] sm:$0xff] %v399_v35  ;;  %v403_v49 = vmax.f32 %v371_v38, 0.0  ;;  %v276_v51 = vmul.f32 %v606_v0, %v240_v34  ;;  %v373_v54 = vadd.f32 %v341_v39, %v309_v44  ;;  %v277_v58 = vmul.f32 %v606_v0, %v241_v41  ;;  %v346_v7 = vld [vmem:[%s620_s26 + $0x58] sm:$0xff]  ;;  %v347_v8 = vld [vmem:[%s620_s26 + $0x60] sm:$0xff]  ;;  %v348_v14 = vld [vmem:[%s620_s26 + $0x68] sm:$0xff] }
  0x18   : > { %432 = vst [vmem:[%s656_s5 + $0x8] sm:$0xff] %v400_v36  ;;  %v404_v53 = vmax.f32 %v372_v43, 0.0  ;;  %v374_v55 = vadd.f32 %v342_v40, %v310_v45  ;;  %v311_v59 = vadd.f32 %v625_v1, %v275_v50  ;;  %v278_v62 = vmul.f32 %v606_v0, %v242_v46  ;;  %v247_v19 = vld [vmem:[%s614_s23 + $0x80] sm:$0xff]  ;;  %v248_v20 = vld [vmem:[%s614_s23 + $0x88] sm:$0xff]  ;;  %v349_v25 = vld [vmem:[%s620_s26 + $0x70] sm:$0xff] }
  0x19   : > { %433 = vst [vmem:[%s656_s5 + $0x10] sm:$0xff] %v401_v42  ;;  %v312_v60 = vadd.f32 %v625_v1, %v276_v51  ;;  %v279_v63 = vmul.f32 %v606_v0, %v243_v47  ;;  %v405_v4 = vmax.f32 %v373_v54, 0.0  ;;  %v313_v6 = vadd.f32 %v625_v1, %v277_v58  ;;  %v350_v26 = vld [vmem:[%s620_s26 + $0x78] sm:$0xff]  ;;  %v249_v27 = vld [vmem:[%s614_s23 + $0x90] sm:$0xff]  ;;  %v251_v33 = vld [vmem:[%s614_s23 + $0xa0] sm:$0xff] }
  0x1a   : > { %434 = vst [vmem:[%s656_s5 + $0x18] sm:$0xff] %v402_v48  ;;  %v406_v5 = vmax.f32 %v374_v55, 0.0  ;;  %v280_v9 = vmul.f32 %v606_v0, %v244_v52  ;;  %v375_v10 = vadd.f32 %v343_v56, %v311_v59  ;;  %v314_v12 = vadd.f32 %v625_v1, %v278_v62  ;;  %v250_v32 = vld [vmem:[%s614_s23 + $0x98] sm:$0xff]  ;;  %v252_v38 = vld [vmem:[%s614_s23 + $0xa8] sm:$0xff]  ;;  %v351_v42 = vld [vmem:[%s620_s26 + $0x80] sm:$0xff] }
  0x1b   : > { %435 = vst [vmem:[%s656_s5 + $0x20] sm:$0xff] %v403_v49  ;;  %v376_v11 = vadd.f32 %v344_v57, %v312_v60  ;;  %v315_v13 = vadd.f32 %v625_v1, %v279_v63  ;;  %v377_v15 = vadd.f32 %v345_v61, %v313_v6  ;;  %v281_v17 = vmul.f32 %v606_v0, %v245_v2  ;;  %v352_v43 = vld [vmem:[%s620_s26 + $0x88] sm:$0xff]  ;;  %v353_v47 = vld [vmem:[%s620_s26 + $0x90] sm:$0xff]  ;;  %v254_v51 = vld [vmem:[%s614_s23 + $0xb8] sm:$0xff] }
  0x1c   : > { %436 = vst [vmem:[%s656_s5 + $0x28] sm:$0xff] %v404_v53  ;;  %v316_v16 = vadd.f32 %v625_v1, %v280_v9  ;;  %v282_v18 = vmul.f32 %v606_v0, %v246_v3  ;;  %v407_v21 = vmax.f32 %v375_v10, 0.0  ;;  %v378_v23 = vadd.f32 %v346_v7, %v314_v12  ;;  %v253_v50 = vld [vmem:[%s614_s23 + $0xb0] sm:$0xff]  ;;  %v354_v55 = vld [vmem:[%s620_s26 + $0x98] sm:$0xff]  ;;  %v355_v56 = vld [vmem:[%s620_s26 + $0xa0] sm:$0xff] }
  0x1d   : > { %437 = vst [vmem:[%s656_s5 + $0x30] sm:$0xff] %v405_v4  ;;  %v408_v22 = vmax.f32 %v376_v11, 0.0  ;;  %v379_v24 = vadd.f32 %v347_v8, %v315_v13  ;;  %v409_v28 = vmax.f32 %v377_v15, 0.0  ;;  %v317_v30 = vadd.f32 %v625_v1, %v281_v17  ;;  %v356_v62 = vld [vmem:[%s620_s26 + $0xa8] sm:$0xff]  ;;  %v357_v11 = vld [vmem:[%s620_s26 + $0xb0] sm:$0xff]  ;;  %v358_v12 = vld [vmem:[%s620_s26 + $0xb8] sm:$0xff] }
  0x1e   : > { %438 = vst [vmem:[%s656_s5 + $0x38] sm:$0xff] %v406_v5  ;;  %v380_v29 = vadd.f32 %v348_v14, %v316_v16  ;;  %v318_v31 = vadd.f32 %v625_v1, %v282_v18  ;;  %v410_v34 = vmax.f32 %v378_v23, 0.0  ;;  %v283_v36 = vmul.f32 %v606_v0, %v247_v19  ;;  %v255_v5 = vld [vmem:[%s614_s23 + $0xc0] sm:$0xff]  ;;  %v256_v6 = vld [vmem:[%s614_s23 + $0xc8] sm:$0xff]  ;;  %v257_v13 = vld [vmem:[%s614_s23 + $0xd0] sm:$0xff] }
  0x1f   : > { %439 = vst [vmem:[%s656_s5 + $0x40] sm:$0xff] %v407_v21  ;;  %v411_v35 = vmax.f32 %v379_v24, 0.0  ;;  %v284_v37 = vmul.f32 %v606_v0, %v248_v20  ;;  %v381_v40 = vadd.f32 %v349_v25, %v317_v30  ;;  %v285_v44 = vmul.f32 %v606_v0, %v249_v27  ;;  %v258_v18 = vld [vmem:[%s614_s23 + $0xd8] sm:$0xff]  ;;  %v259_v19 = vld [vmem:[%s614_s23 + $0xe0] sm:$0xff]  ;;  %v260_v24 = vld [vmem:[%s614_s23 + $0xe8] sm:$0xff] }
  0x20   : > { %440 = vst [vmem:[%s656_s5 + $0x48] sm:$0xff] %v408_v22  ;;  %v412_v39 = vmax.f32 %v380_v29, 0.0  ;;  %v382_v41 = vadd.f32 %v350_v26, %v318_v31  ;;  %v319_v45 = vadd.f32 %v625_v1, %v283_v36  ;;  %v286_v48 = vmul.f32 %v606_v0, %v250_v32  ;;  %v360_v29 = vld [vmem:[%s620_s26 + $0xc8] sm:$0xff]  ;;  %v261_v36 = vld [vmem:[%s614_s23 + $0xf0] sm:$0xff] }
  0x21   : > { %441 = vst [vmem:[%s656_s5 + $0x50] sm:$0xff] %v409_v28  ;;  %v320_v46 = vadd.f32 %v625_v1, %v284_v37  ;;  %v287_v49 = vmul.f32 %v606_v0, %v251_v33  ;;  %v413_v52 = vmax.f32 %v381_v40, 0.0  ;;  %v321_v54 = vadd.f32 %v625_v1, %v285_v44  ;;  %v359_v28 = vld [vmem:[%s620_s26 + $0xc0] sm:$0xff]  ;;  %v361_v33 = vld [vmem:[%s620_s26 + $0xd0] sm:$0xff]  ;;  %v262_v37 = vld [vmem:[%s614_s23 + $0xf8] sm:$0xff] }
  0x22   : > { %442 = vst [vmem:[%s656_s5 + $0x58] sm:$0xff] %v410_v34  ;;  %v414_v53 = vmax.f32 %v382_v41, 0.0  ;;  %v288_v57 = vmul.f32 %v606_v0, %v252_v38  ;;  %v383_v58 = vadd.f32 %v351_v42, %v319_v45  ;;  %v322_v60 = vadd.f32 %v625_v1, %v286_v48  ;;  %v362_v41 = vld [vmem:[%s620_s26 + $0xd8] sm:$0xff]  ;;  %v363_v42 = vld [vmem:[%s620_s26 + $0xe0] sm:$0xff]  ;;  %v364_v48 = vld [vmem:[%s620_s26 + $0xe8] sm:$0xff] }
  0x23   : > { %443 = vst [vmem:[%s656_s5 + $0x60] sm:$0xff] %v411_v35  ;;  %v384_v59 = vadd.f32 %v352_v43, %v320_v46  ;;  %v323_v61 = vadd.f32 %v625_v1, %v287_v49  ;;  %v385_v63 = vadd.f32 %v353_v47, %v321_v54  ;;  %v289_v3 = vmul.f32 %v606_v0, %v253_v50 }
  0x24   : > { %444 = vst [vmem:[%s656_s5 + $0x68] sm:$0xff] %v412_v39  ;;  %v324_v2 = vadd.f32 %v625_v1, %v288_v57  ;;  %v290_v4 = vmul.f32 %v606_v0, %v254_v51  ;;  %v415_v7 = vmax.f32 %v383_v58, 0.0  ;;  %v386_v9 = vadd.f32 %v354_v55, %v322_v60  ;;  %v365_v57 = vld [vmem:[%s620_s26 + $0xf0] sm:$0xff]  ;;  %v366_v58 = vld [vmem:[%s620_s26 + $0xf8] sm:$0xff] }
  0x25   : > { %445 = vst [vmem:[%s656_s5 + $0x70] sm:$0xff] %v413_v52  ;;  %v416_v8 = vmax.f32 %v384_v59, 0.0  ;;  %v387_v10 = vadd.f32 %v355_v56, %v323_v61  ;;  %v417_v14 = vmax.f32 %v385_v63, 0.0  ;;  %v325_v16 = vadd.f32 %v625_v1, %v289_v3 }
  0x26   : > { %446 = vst [vmem:[%s656_s5 + $0x78] sm:$0xff] %v414_v53  ;;  %v388_v15 = vadd.f32 %v356_v62, %v324_v2  ;;  %v326_v17 = vadd.f32 %v625_v1, %v290_v4  ;;  %v418_v20 = vmax.f32 %v386_v9, 0.0  ;;  %v291_v22 = vmul.f32 %v606_v0, %v255_v5 }
  0x27   : > { %447 = vst [vmem:[%s656_s5 + $0x80] sm:$0xff] %v415_v7  ;;  %v419_v21 = vmax.f32 %v387_v10, 0.0  ;;  %v292_v23 = vmul.f32 %v606_v0, %v256_v6  ;;  %v389_v26 = vadd.f32 %v357_v11, %v325_v16  ;;  %v293_v30 = vmul.f32 %v606_v0, %v257_v13 }
  0x28   : > { %448 = vst [vmem:[%s656_s5 + $0x88] sm:$0xff] %v416_v8  ;;  %v420_v25 = vmax.f32 %v388_v15, 0.0  ;;  %v390_v27 = vadd.f32 %v358_v12, %v326_v17  ;;  %v327_v31 = vadd.f32 %v625_v1, %v291_v22  ;;  %v294_v34 = vmul.f32 %v606_v0, %v258_v18 }
  0x29   : > { %449 = vst [vmem:[%s656_s5 + $0x90] sm:$0xff] %v417_v14  ;;  %v328_v32 = vadd.f32 %v625_v1, %v292_v23  ;;  %v295_v35 = vmul.f32 %v606_v0, %v259_v19  ;;  %v421_v38 = vmax.f32 %v389_v26, 0.0  ;;  %v329_v40 = vadd.f32 %v625_v1, %v293_v30 }
  0x2a   : > { %450 = vst [vmem:[%s656_s5 + $0x98] sm:$0xff] %v418_v20  ;;  %v422_v39 = vmax.f32 %v390_v27, 0.0  ;;  %v296_v43 = vmul.f32 %v606_v0, %v260_v24  ;;  %v391_v44 = vadd.f32 %v359_v28, %v327_v31  ;;  %v330_v46 = vadd.f32 %v625_v1, %v294_v34 }
  0x2b   : > { %451 = vst [vmem:[%s656_s5 + $0xa0] sm:$0xff] %v419_v21  ;;  %v392_v45 = vadd.f32 %v360_v29, %v328_v32  ;;  %v331_v47 = vadd.f32 %v625_v1, %v295_v35  ;;  %v393_v49 = vadd.f32 %v361_v33, %v329_v40  ;;  %v297_v51 = vmul.f32 %v606_v0, %v261_v36 }
  0x2c   : > { %452 = vst [vmem:[%s656_s5 + $0xa8] sm:$0xff] %v420_v25  ;;  %v332_v50 = vadd.f32 %v625_v1, %v296_v43  ;;  %v298_v52 = vmul.f32 %v606_v0, %v262_v37  ;;  %v423_v53 = vmax.f32 %v391_v44, 0.0  ;;  %v394_v55 = vadd.f32 %v362_v41, %v330_v46 }
  0x2d   : > { %453 = vst [vmem:[%s656_s5 + $0xb0] sm:$0xff] %v421_v38  ;;  %v424_v54 = vmax.f32 %v392_v45, 0.0  ;;  %v395_v56 = vadd.f32 %v363_v42, %v331_v47  ;;  %v425_v59 = vmax.f32 %v393_v49, 0.0  ;;  %v333_v61 = vadd.f32 %v625_v1, %v297_v51 }
  0x2e   : > { %454 = vst [vmem:[%s656_s5 + $0xb8] sm:$0xff] %v422_v39  ;;  %v396_v60 = vadd.f32 %v364_v48, %v332_v50  ;;  %v334_v0 = vadd.f32 %v625_v1, %v298_v52  ;;  %v426_v62 = vmax.f32 %v394_v55, 0.0 }
  0x2f   : > { %455 = vst [vmem:[%s656_s5 + $0xc0] sm:$0xff] %v423_v53  ;;  %v427_v63 = vmax.f32 %v395_v56, 0.0  ;;  %v397_v3 = vadd.f32 %v365_v57, %v333_v61 }
  0x30   : > { %456 = vst [vmem:[%s656_s5 + $0xc8] sm:$0xff] %v424_v54  ;;  %v428_v2 = vmax.f32 %v396_v60, 0.0  ;;  %v398_v4 = vadd.f32 %v366_v58, %v334_v0 }
  0x31   : > { %457 = vst [vmem:[%s656_s5 + $0xd0] sm:$0xff] %v425_v59  ;;  %v429_v5 = vmax.f32 %v397_v3, 0.0 }
  0x32   : > { %458 = vst [vmem:[%s656_s5 + $0xd8] sm:$0xff] %v426_v62  ;;  %v430_v6 = vmax.f32 %v398_v4, 0.0 }
  0x33   : > { %459 = vst [vmem:[%s656_s5 + $0xe0] sm:$0xff] %v427_v63 }
  0x34   : > { %460 = vst [vmem:[%s656_s5 + $0xe8] sm:$0xff] %v428_v2 }
  0x35   : > { %461 = vst [vmem:[%s656_s5 + $0xf0] sm:$0xff] %v429_v5 }
  0x36   : > { %462 = vst [vmem:[%s656_s5 + $0xf8] sm:$0xff] %v430_v6 }
  0x37 PF: > { %s14_s15 = sadd.s32 1, %s568_s15  }
  0x38   : > { %p11_p4 = scmp.ge.s32.totalorder %s14_s15, 6  }
  0x3a   :  { %13 = sbr.rel (!%p11_p4) target bundleno = 1 (0x1), region = 69 }

// kernel: basic_block_forward.3
= control target key start
LH: loop header
LB: loop body
LE: loop exit
PB: predicated region body
PF: predicated region fallthrough
CT: control target
= control target key end

     0   :  { %s1431_s12 = smov 0   ;;  %s2001_s0 = inlined_call_operand.vmem [shape: f32[8,128,128], index: 0, kind: input, shape index: {}]   ;;  %s2002_s1 = inlined_call_operand.vmem [shape: bf16[3,128,128], index: 1, kind: input, shape index: {}]   ;;  %s2003_s2 = inlined_call_operand.vmem [shape: f32[8,128,128], index: 2, kind: output, shape index: {0}]   ;;  %s2004_s3 = inlined_call_operand.vmem [shape: f32[4,2,128], index: 3, kind: output, shape index: {1}]  }
   0x1 LB: > { %s1437_s13 = sadd.s32 4294967295, %s1409_s12   ;;  %p1207_p0 = scmp.ge.s32.totalorder %s1409_s12, 1  ;;  %s1409_s12 = sphi %s1431_s12, %s14_s12  }
   0x2   : > { %p142_p1 = scmp.lt.s32.totalorder %s1409_s12, 5 }
   0x4   : > { %p143_p2 = pnand %p1207_p0, %p142_p1 }
   0x5   : > { %s1208_s5 = sshll.u32 (!%p143_p2), %s1437_s13, 1  ;;  %p186_p4 = scmp.lt.s32.totalorder (!%p143_p2), %s1437_s13, 3 }
   0x6   : > { %146 = sbr.rel (%p143_p2) target bundleno = 398 (0x18e), region = 28  ;;  %p173_p3 = scmp.lt.s32.totalorder (!%p143_p2), %s1208_s5, 7 }
   0xb   : > { %v1362_v0 = vld [vmem:[%s2002_s1 + $0x38] sm:$0xff]  ;;  %v1361_v3 = vld [vmem:[%s2002_s1 + $0x30] sm:$0xff]  ;;  %v1360_v6 = vld [vmem:[%s2002_s1 + $0x28] sm:$0xff]  ;;  %s2006_s5 = smov (!%p173_p3, %s1208_s5), 7  ;;  %s2008_s13 = smov (!%p186_p4, %s1437_s13), 3 }
   0xc   : > { %v1447_v1 = vld [vmem:[%s2002_s1 + $0xb8] sm:$0xff]  ;;  %319 = vmatpush.bf16.msra.mxu0 %v1362_v0  ;;  %1371 = vmatpush.bf16.msra.mxu3 %v1362_v0  ;;  %v1462_v4 = vld [vmem:[%s2002_s1 + $0xb0] sm:$0xff]  ;;  %v1368_v7 = vld [vmem:[%s2002_s1 + $0xa8] sm:$0xff]  ;;  %s1345_s26 = sshll.u32 %s2006_s5, 7  ;;  %s1214_s5 = sshll.u32 %s2008_s13, 1 }
   0xd   : > { %v1452_v2 = vld [vmem:[%s2002_s1 + $0x78] sm:$0xff]  ;;  %473 = vmatpush.bf16.msra.mxu1 %v1447_v1  ;;  %v1467_v5 = vld [vmem:[%s2002_s1 + $0x70] sm:$0xff]  ;;  %v1480_v8 = vld [vmem:[%s2002_s1 + $0x68] sm:$0xff]  ;;  %s1530_s4 = scalar_lea.vmem %s2001_s0, %s1345_s26  ;;  %s1638_s20 = scalar_lea.vmem %s2003_s2, %s1345_s26 }
   0xe   : > { %740 = vmatpush.bf16.msra.mxu2 %v1452_v2  ;;  %v1359_v9 = vld [vmem:[%s2002_s1 + $0x20] sm:$0xff]  ;;  %v1358_v12 = vld [vmem:[%s2002_s1 + $0x18] sm:$0xff]  ;;  %v1357_v15 = vld [vmem:[%s2002_s1 + $0x10] sm:$0xff]  ;;  %s189_s23 = scalar_lea.vmem %s2004_s3, %s1214_s5 }
   0xf   : > { %v1367_v10 = vld [vmem:[%s2002_s1 + $0xa0] sm:$0xff]  ;;  %v1366_v13 = vld [vmem:[%s2002_s1 + $0x98] sm:$0xff]  ;;  %v1365_v16 = vld [vmem:[%s2002_s1 + $0x90] sm:$0xff] }
  0x10   : > { %320 = vmatpush.bf16.msra.mxu0 %v1361_v3  ;;  %1372 = vmatpush.bf16.msra.mxu3 %v1361_v3  ;;  %v1493_v11 = vld [vmem:[%s2002_s1 + $0x60] sm:$0xff]  ;;  %v1505_v14 = vld [vmem:[%s2002_s1 + $0x58] sm:$0xff]  ;;  %v1519_v17 = vld [vmem:[%s2002_s1 + $0x50] sm:$0xff]  ;;  %v562_v3 = vlaneseq }
  0x11   : > { %474 = vmatpush.bf16.msra.mxu1 %v1462_v4  ;;  %v1356_v18 = vld [vmem:[%s2002_s1 + $0x8] sm:$0xff]  ;;  %v1355_v21 = vld [vmem:[%s2002_s1] sm:$0xff]  ;;  %v192_v30 = vld [vmem:[%s1530_s4 + $0x10] sm:$0xff] }
  0x12   : > { %741 = vmatpush.bf16.msra.mxu2 %v1467_v5  ;;  %v1364_v19 = vld [vmem:[%s2002_s1 + $0x88] sm:$0xff]  ;;  %v190_v22 = vld [vmem:[%s1530_s4] sm:$0xff]  ;;  %v193_v31 = vld [vmem:[%s1530_s4 + $0x18] sm:$0xff] }
  0x13   : > { %v1539_v20 = vld [vmem:[%s2002_s1 + $0x48] sm:$0xff]  ;;  %v214_v24 = vld [vmem:[%s1530_s4 + $0xc0] sm:$0xff]  ;;  %v216_v32 = vld [vmem:[%s1530_s4 + $0xd0] sm:$0xff]  ;;  %v223_v34 = vpack.c.bf16 %v193_v31, %v192_v30 }
  0x14   : > { %321 = vmatpush.bf16.msra.mxu0 %v1360_v6  ;;  %1373 = vmatpush.bf16.msra.mxu3 %v1360_v6  ;;  %v191_v23 = vld [vmem:[%s1530_s4 + $0x8] sm:$0xff]  ;;  %v1363_v26 = vld [vmem:[%s2002_s1 + $0x80] sm:$0xff]  ;;  %v217_v33 = vld [vmem:[%s1530_s4 + $0xd8] sm:$0xff]  ;;  %v1613_v6 = vshrl.u32 %v562_v3, 7 }
  0x15   : > { %475 = vmatpush.bf16.msra.mxu1 %v1368_v7  ;;  %v215_v25 = vld [vmem:[%s1530_s4 + $0xc8] sm:$0xff]  ;;  %v1347_v27 = vld [vmem:[%s2002_s1 + $0x40] sm:$0xff]  ;;  %v222_v28 = vpack.c.bf16 %v191_v23, %v190_v22  ;;  %v1564_v35 = vpack.c.bf16 %v217_v33, %v216_v32  ;;  %v196_v42 = vld [vmem:[%s1530_s4 + $0x30] sm:$0xff] }
  0x16   : > { %742 = vmatpush.bf16.msra.mxu2 %v1480_v8  ;;  %v1555_v29 = vpack.c.bf16 %v215_v25, %v214_v24  ;;  %v194_v36 = vld [vmem:[%s1530_s4 + $0x20] sm:$0xff]  ;;  %v195_v37 = vld [vmem:[%s1530_s4 + $0x28] sm:$0xff]  ;;  %v197_v43 = vld [vmem:[%s1530_s4 + $0x38] sm:$0xff]  ;;  %vm627_vm0 = vcmp.lt.s32.totalorder %v1613_v6, 1  ;;  %vm877_vm1 = vcmp.lt.s32.totalorder %v1613_v6, 7  ;;  %vm579_vm2 = vcmp.eq.s32.totalorder %v1613_v6, 0 }
  0x17   : > { %v218_v38 = vld [vmem:[%s1530_s4 + $0xe0] sm:$0xff]  ;;  %v219_v39 = vld [vmem:[%s1530_s4 + $0xe8] sm:$0xff]  ;;  %v224_v40 = vpack.c.bf16 %v195_v37, %v194_v36  ;;  %v220_v44 = vld [vmem:[%s1530_s4 + $0xf0] sm:$0xff]  ;;  %v225_v46 = vpack.c.bf16 %v197_v43, %v196_v42 }
  0x18   : > { %322 = vmatpush.bf16.msra.mxu0 %v1359_v9  ;;  %1374 = vmatpush.bf16.msra.mxu3 %v1359_v9  ;;  %v1571_v41 = vpack.c.bf16 %v219_v39, %v218_v38  ;;  %v221_v45 = vld [vmem:[%s1530_s4 + $0xf8] sm:$0xff]  ;;  %v198_v48 = vld [vmem:[%s1530_s4 + $0x40] sm:$0xff]  ;;  %v199_v49 = vld [vmem:[%s1530_s4 + $0x48] sm:$0xff] }
  0x19   : > { %476 = vmatpush.bf16.msra.mxu1 %v1367_v10  ;;  %v1582_v47 = vpack.c.bf16 %v221_v45, %v220_v44  ;;  %v226_v50 = vpack.c.bf16 %v199_v49, %v198_v48  ;;  %v200_v51 = vld [vmem:[%s1530_s4 + $0x50] sm:$0xff]  ;;  %v201_v52 = vld [vmem:[%s1530_s4 + $0x58] sm:$0xff]  ;;  %v202_v54 = vld [vmem:[%s1530_s4 + $0x60] sm:$0xff] }
  0x1a   : > { %743 = vmatpush.bf16.msra.mxu2 %v1493_v11  ;;  %v227_v53 = vpack.c.bf16 %v201_v52, %v200_v51  ;;  %v203_v55 = vld [vmem:[%s1530_s4 + $0x68] sm:$0xff]  ;;  %v204_v57 = vld [vmem:[%s1530_s4 + $0x70] sm:$0xff]  ;;  %v205_v58 = vld [vmem:[%s1530_s4 + $0x78] sm:$0xff] }
  0x1b   : > { %v228_v56 = vpack.c.bf16 %v203_v55, %v202_v54  ;;  %v229_v59 = vpack.c.bf16 %v205_v58, %v204_v57  ;;  %v206_v60 = vld [vmem:[%s1530_s4 + $0x80] sm:$0xff]  ;;  %v207_v61 = vld [vmem:[%s1530_s4 + $0x88] sm:$0xff] }
  0x1c   : > { %323 = vmatpush.bf16.msra.mxu0 %v1358_v12  ;;  %1375 = vmatpush.bf16.msra.mxu3 %v1358_v12  ;;  %v230_v62 = vpack.c.bf16 %v207_v61, %v206_v60  ;;  %v210_v36 = vld [vmem:[%s1530_s4 + $0xa0] sm:$0xff]  ;;  %v211_v37 = vld [vmem:[%s1530_s4 + $0xa8] sm:$0xff] }
  0x1d   : > { %477 = vmatpush.bf16.msra.mxu1 %v1366_v13  ;;  %v232_v44 = vpack.c.bf16 %v211_v37, %v210_v36 }
  0x1e   : > { %744 = vmatpush.bf16.msra.mxu2 %v1505_v14 }
  0x20   : > { %324 = vmatpush.bf16.msra.mxu0 %v1357_v15  ;;  %1376 = vmatpush.bf16.msra.mxu3 %v1357_v15 }
  0x21   : > { %478 = vmatpush.bf16.msra.mxu1 %v1365_v16 }
  0x22   : > { %745 = vmatpush.bf16.msra.mxu2 %v1519_v17 }
  0x24   : > { %325 = vmatpush.bf16.msra.mxu0 %v1356_v18  ;;  %1377 = vmatpush.bf16.msra.mxu3 %v1356_v18 }
  0x25   : > { %479 = vmatpush.bf16.msra.mxu1 %v1364_v19 }
  0x26   : > { %746 = vmatpush.bf16.msra.mxu2 %v1539_v20 }
  0x28   : > { %326 = vmatpush.bf16.msra.mxu0 %v1355_v21  ;;  %1378 = vmatpush.bf16.msra.mxu3 %v1355_v21 }
  0x29   : > { %480 = vmatpush.bf16.msra.mxu1 %v1363_v26 }
  0x2a   : > { %747 = vmatpush.bf16.msra.mxu2 %v1347_v27 }
  0x2b   : > { %327 = vmatmul.bf16.vlgmr.msra.gmra.mxu0 %v222_v28  ;;  %387 = vmatmul.bf16.vlgmr.msra.gmra.mxu3 %v1555_v29 }
  0x2c   : > { %1379 = vmatpush.bf16.msrb.mxu3 %v1447_v1  ;;  %481 = vmatmul.bf16.vlgmr.msra.gmra.mxu1 %v222_v28 }
  0x2d   : > { %748 = vmatmul.bf16.vlgmr.msra.gmra.mxu2 %v222_v28 }
  0x30   : > { %1380 = vmatpush.bf16.msrb.mxu3 %v1462_v4 }
  0x34   : > { %1381 = vmatpush.bf16.msrb.mxu3 %v1368_v7  ;;  %v208_v7 = vld [vmem:[%s1530_s4 + $0x90] sm:$0xff] }
  0x38   : > { %1382 = vmatpush.bf16.msrb.mxu3 %v1367_v10 }
  0x3b   : > { %332 = vmatmul.bf16.gmra.mxu0 %v223_v34  ;;  %392 = vmatmul.bf16.gmra.mxu3 %v1564_v35 }
  0x3c   : > { %1383 = vmatpush.bf16.msrb.mxu3 %v1366_v13  ;;  %486 = vmatmul.bf16.gmra.mxu1 %v223_v34 }
  0x3d   : > { %753 = vmatmul.bf16.gmra.mxu2 %v223_v34 }
  0x40   : > { %1384 = vmatpush.bf16.msrb.mxu3 %v1365_v16 }
  0x44   : > { %1385 = vmatpush.bf16.msrb.mxu3 %v1364_v19 }
  0x48   : > { %1386 = vmatpush.bf16.msrb.mxu3 %v1363_v26 }
  0x4b   : > { %337 = vmatmul.bf16.gmra.mxu0 %v224_v40  ;;  %397 = vmatmul.bf16.gmra.mxu3 %v1571_v41 }
  0x4c   : > { %1387 = vmatpush.bf16.msra.mxu3 %v1452_v2  ;;  %491 = vmatmul.bf16.gmra.mxu1 %v224_v40 }
  0x4d   : > { %758 = vmatmul.bf16.gmra.mxu2 %v224_v40 }
  0x50   : > { %1388 = vmatpush.bf16.msra.mxu3 %v1467_v5 }
  0x54   : > { %1389 = vmatpush.bf16.msra.mxu3 %v1480_v8  ;;  %v209_v8 = vld [vmem:[%s1530_s4 + $0x98] sm:$0xff] }
  0x58   : > { %1390 = vmatpush.bf16.msra.mxu3 %v1493_v11 }
  0x5b   : > { %342 = vmatmul.bf16.gmra.mxu0 %v225_v46  ;;  %402 = vmatmul.bf16.gmra.mxu3 %v1582_v47 }
  0x5c   : > { %1391 = vmatpush.bf16.msra.mxu3 %v1505_v14  ;;  %496 = vmatmul.bf16.gmra.mxu1 %v225_v46  ;;  %v231_v14 = vpack.c.bf16 %v209_v8, %v208_v7  ;;  %v213_v7 = vld [vmem:[%s1530_s4 + $0xb8] sm:$0xff] }
  0x5d   : > { %763 = vmatmul.bf16.gmra.mxu2 %v225_v46 }
  0x60   : > { %1392 = vmatpush.bf16.msra.mxu3 %v1519_v17 }
  0x64   : > { %1393 = vmatpush.bf16.msra.mxu3 %v1539_v20 }
  0x68   : > { %1394 = vmatpush.bf16.msra.mxu3 %v1347_v27 }
  0x6b   : > { %347 = vmatmul.bf16.gmra.mxu0 %v226_v50  ;;  %541 = vmatmul.bf16.vlgmr.msrb.gmra.mxu3 %v1555_v29 }
  0x6c   : > { %501 = vmatmul.bf16.gmra.mxu1 %v226_v50 }
  0x6d   : > { %768 = vmatmul.bf16.gmra.mxu2 %v226_v50 }
  0x7b   : > { %352 = vmatmul.bf16.gmra.mxu0 %v227_v53  ;;  %546 = vmatmul.bf16.gmra.mxu3 %v1564_v35 }
  0x7c   : > { %506 = vmatmul.bf16.gmra.mxu1 %v227_v53 }
  0x7d   : > { %773 = vmatmul.bf16.gmra.mxu2 %v227_v53 }
  0x8b   : > { %357 = vmatmul.bf16.gmra.mxu0 %v228_v56  ;;  %551 = vmatmul.bf16.gmra.mxu3 %v1571_v41 }
  0x8c   : > { %511 = vmatmul.bf16.gmra.mxu1 %v228_v56 }
  0x8d   : > { %778 = vmatmul.bf16.gmra.mxu2 %v228_v56 }
  0x9b   : > { %362 = vmatmul.bf16.gmra.mxu0 %v229_v59  ;;  %556 = vmatmul.bf16.gmra.mxu3 %v1582_v47 }
  0x9c   : > { %516 = vmatmul.bf16.gmra.mxu1 %v229_v59 }
  0x9d   : > { %783 = vmatmul.bf16.gmra.mxu2 %v229_v59 }
  0xa8   : > { %v1602_v63 = vpop.f32.mrf.mxu0 }
  0xa9   : > { %v1604_v0 = vpop.f32.mrf.mxu1  ;;  %v595_v15 = vrot.slane %v1602_v63, 7 }
  0xab   : > { %367 = vmatmul.bf16.gmra.mxu0 %v230_v62  ;;  %808 = vmatmul.bf16.vlgmr.msra.gmra.mxu3 %v1555_v29 }
  0xac   : > { %521 = vmatmul.bf16.gmra.mxu1 %v230_v62 }
  0xad   : > { %788 = vmatmul.bf16.gmra.mxu2 %v230_v62 }
  0xae   : > { %v1607_v1 = vpop.f32.mrf.mxu3 }
  0xaf   : > { %v619_v9 = vrot.slane %v1607_v1, 7 }
  0xb0   : > { %v1609_v2 = vpop.f32.mrf.mxu2  ;;  %v330_v4 = vpop.f32.mrf.mxu0 }
  0xb1   : > { %v1611_v5 = vpop.f32.mrf.mxu1  ;;  %v596_v10 = vrot.slane %v330_v4, 7  ;;  %v212_v4 = vld [vmem:[%s1530_s4 + $0xb0] sm:$0xff] }
  0xb2   : > { %v846_v19 = vrot.slane %v1611_v5, 1 }
  0xb3   : > { %v658_v20 = vsel %vm627_vm0, %v595_v15, %v596_v10 }
  0xb6   : > { %v390_v11 = vpop.f32.mrf.mxu3 }
  0xb7   : > { %v620_v12 = vrot.slane %v390_v11, 7 }
  0xb8   : > { %v751_v13 = vpop.f32.mrf.mxu2  ;;  %v333_v16 = vpop.f32.mrf.mxu0 }
  0xb9   : > { %v487_v17 = vpop.f32.mrf.mxu1  ;;  %v1624_v18 = vsel %vm627_vm0, %v619_v9, %v620_v12  ;;  %v752_v22 = vadd.f32 %v751_v13, %v658_v20  ;;  %v597_v25 = vrot.slane %v333_v16, 7 }
  0xba   : > { %v847_v21 = vrot.slane %v487_v17, 1 }
  0xbb   : > { %372 = vmatmul.bf16.gmra.mxu0 %v231_v14  ;;  %813 = vmatmul.bf16.gmra.mxu3 %v1564_v35  ;;  %v657_v32 = vsel %vm627_vm0, %v596_v10, %v597_v25 }
  0xbc   : > { %v907_v23 = vsel %vm877_vm1, %v846_v19, %v847_v21  ;;  %526 = vmatmul.bf16.gmra.mxu1 %v231_v14 }
  0xbd   : > { %793 = vmatmul.bf16.gmra.mxu2 %v231_v14  ;;  %v1644_v24 = vadd.f32 %v907_v23, %v752_v22  ;;  %v233_v14 = vpack.c.bf16 %v213_v7, %v212_v4 }
  0xbe   : > { %v393_v26 = vpop.f32.mrf.mxu3 }
  0xbf   : > { %975 = vst [vmem:[%s1638_s20 + $0x8] sm:$0xff] %v1644_v24  ;;  %v621_v27 = vrot.slane %v393_v26, 7 }
  0xc0   : > { %v754_v28 = vpop.f32.mrf.mxu2  ;;  %v335_v29 = vpop.f32.mrf.mxu0 }
  0xc1   : > { %v489_v30 = vpop.f32.mrf.mxu1  ;;  %v1650_v31 = vsel %vm627_vm0, %v620_v12, %v621_v27  ;;  %v755_v34 = vadd.f32 %v754_v28, %v657_v32  ;;  %v598_v39 = vrot.slane %v335_v29, 7 }
  0xc2   : > { %v848_v33 = vrot.slane %v489_v30, 1 }
  0xc3   : > { %v656_v49 = vsel %vm627_vm0, %v597_v25, %v598_v39 }
  0xc4   : > { %v906_v35 = vsel %vm877_vm1, %v847_v21, %v848_v33 }
  0xc5   : > { %v1658_v38 = vadd.f32 %v906_v35, %v755_v34 }
  0xc6   : > { %v395_v40 = vpop.f32.mrf.mxu3 }
  0xc7   : > { %976 = vst [vmem:[%s1638_s20 + $0x10] sm:$0xff] %v1658_v38  ;;  %v622_v42 = vrot.slane %v395_v40, 7 }
  0xc8   : > { %v756_v43 = vpop.f32.mrf.mxu2  ;;  %v338_v45 = vpop.f32.mrf.mxu0 }
  0xc9   : > { %v492_v46 = vpop.f32.mrf.mxu1  ;;  %v1664_v48 = vsel %vm627_vm0, %v621_v27, %v622_v42  ;;  %v757_v51 = vadd.f32 %v756_v43, %v656_v49  ;;  %v599_v54 = vrot.slane %v338_v45, 7 }
  0xca   : > { %v849_v50 = vrot.slane %v492_v46, 1 }
  0xcb   : > { %377 = vmatmul.bf16.gmra.mxu0 %v232_v44  ;;  %818 = vmatmul.bf16.gmra.mxu3 %v1571_v41  ;;  %v655_v60 = vsel %vm627_vm0, %v598_v39, %v599_v54 }
  0xcc   : > { %v905_v52 = vsel %vm877_vm1, %v848_v33, %v849_v50  ;;  %531 = vmatmul.bf16.gmra.mxu1 %v232_v44 }
  0xcd   : > { %798 = vmatmul.bf16.gmra.mxu2 %v232_v44  ;;  %v1671_v53 = vadd.f32 %v905_v52, %v757_v51  ;;  %v845_v51 = vrot.slane %v1604_v0, 1 }
  0xce   : > { %v398_v55 = vpop.f32.mrf.mxu3 }
  0xcf   : > { %977 = vst [vmem:[%s1638_s20 + $0x18] sm:$0xff] %v1671_v53  ;;  %v623_v56 = vrot.slane %v398_v55, 7 }
  0xd0   : > { %v759_v57 = vpop.f32.mrf.mxu2  ;;  %v340_v58 = vpop.f32.mrf.mxu0 }
  0xd1   : > { %v494_v59 = vpop.f32.mrf.mxu1  ;;  %v1677_v41 = vsel %vm627_vm0, %v622_v42, %v623_v56  ;;  %v760_v62 = vadd.f32 %v759_v57, %v655_v60  ;;  %v600_v10 = vrot.slane %v340_v58, 7 }
  0xd2   : > { %v850_v61 = vrot.slane %v494_v59, 1 }
  0xd3   : > { %v654_v21 = vsel %vm627_vm0, %v599_v54, %v600_v10 }
  0xd4   : > { %v904_v3 = vsel %vm877_vm1, %v849_v50, %v850_v61 }
  0xd5   : > { %v1685_v8 = vadd.f32 %v904_v3, %v760_v62  ;;  %v1045_v62 = vmul.f32 %v1644_v24, %v1644_v24 }
  0xd6   : > { %v400_v11 = vpop.f32.mrf.mxu3 }
  0xd7   : > { %978 = vst [vmem:[%s1638_s20 + $0x20] sm:$0xff] %v1685_v8  ;;  %v624_v12 = vrot.slane %v400_v11, 7 }
  0xd8   : > { %v761_v13 = vpop.f32.mrf.mxu2  ;;  %v343_v16 = vpop.f32.mrf.mxu0 }
  0xd9   : > { %v497_v17 = vpop.f32.mrf.mxu1  ;;  %v1691_v20 = vsel %vm627_vm0, %v623_v56, %v624_v12  ;;  %v762_v23 = vadd.f32 %v761_v13, %v654_v21  ;;  %v601_v27 = vrot.slane %v343_v16, 7 }
  0xda   : > { %v851_v22 = vrot.slane %v497_v17, 1 }
  0xdb   : > { %382 = vmatmul.bf16.gmra.mxu0 %v233_v14  ;;  %823 = vmatmul.bf16.gmra.mxu3 %v1582_v47  ;;  %v653_v47 = vsel %vm627_vm0, %v600_v10, %v601_v27 }
  0xdc   : > { %v903_v25 = vsel %vm877_vm1, %v850_v61, %v851_v22  ;;  %536 = vmatmul.bf16.gmra.mxu1 %v233_v14 }
  0xdd   : > { %803 = vmatmul.bf16.gmra.mxu2 %v233_v14  ;;  %v1698_v26 = vadd.f32 %v903_v25, %v762_v23  ;;  %v1047_v14 = vmul.f32 %v1671_v53, %v1671_v53 }
  0xde   : > { %v403_v28 = vpop.f32.mrf.mxu3 }
  0xdf   : > { %979 = vst [vmem:[%s1638_s20 + $0x28] sm:$0xff] %v1698_v26  ;;  %v625_v29 = vrot.slane %v403_v28, 7 }
  0xe0   : > { %v764_v30 = vpop.f32.mrf.mxu2  ;;  %v345_v32 = vpop.f32.mrf.mxu0 }
  0xe1   : > { %v499_v33 = vpop.f32.mrf.mxu1  ;;  %v1704_v34 = vsel %vm627_vm0, %v624_v12, %v625_v29  ;;  %v765_v36 = vadd.f32 %v764_v30, %v653_v47  ;;  %v602_v40 = vrot.slane %v345_v32, 7 }
  0xe2   : > { %v852_v35 = vrot.slane %v499_v33, 1 }
  0xe3   : > { %v652_v52 = vsel %vm627_vm0, %v601_v27, %v602_v40 }
  0xe4   : > { %v902_v37 = vsel %vm877_vm1, %v851_v22, %v852_v35  ;;  %v1048_v22 = vmul.f32 %v1685_v8, %v1685_v8 }
  0xe5   : > { %v948_v39 = vadd.f32 %v902_v37, %v765_v36 }
  0xe6   : > { %v405_v42 = vpop.f32.mrf.mxu3 }
  0xe7   : > { %980 = vst [vmem:[%s1638_s20 + $0x30] sm:$0xff] %v948_v39  ;;  %v626_v43 = vrot.slane %v405_v42, 7  ;;  %v1050_v47 = vmul.f32 %v948_v39, %v948_v39 }
  0xe8   : > { %v766_v44 = vpop.f32.mrf.mxu2  ;;  %v348_v45 = vpop.f32.mrf.mxu0 }
  0xe9   : > { %v502_v46 = vpop.f32.mrf.mxu1  ;;  %v659_v49 = vsel %vm627_vm0, %v626_v43, %v595_v15  ;;  %v1718_v50 = vsel %vm627_vm0, %v625_v29, %v626_v43  ;;  %v767_v56 = vadd.f32 %v766_v44, %v652_v52  ;;  %v908_v15 = vsel %vm877_vm1, %v845_v51, %v846_v19 }
  0xea   : > { %v853_v54 = vrot.slane %v502_v46, 1  ;;  %v660_v55 = vsel %vm579_vm2, 0.0, %v659_v49  ;;  %v603_v60 = vrot.slane %v348_v45, 7  ;;  %v1046_v19 = vmul.f32 %v1658_v38, %v1658_v38 }
  0xeb   : > { %v750_v63 = vadd.f32 %v1609_v2, %v660_v55  ;;  %v1049_v29 = vmul.f32 %v1698_v26, %v1698_v26 }
  0xec   : > { %v901_v57 = vsel %vm877_vm1, %v852_v35, %v853_v54  ;;  %v651_v12 = vsel %vm627_vm0, %v602_v40, %v603_v60 }
  0xed   : > { %v949_v58 = vadd.f32 %v901_v57, %v767_v56  ;;  %v942_v59 = vadd.f32 %v908_v15, %v750_v63 }
  0xee   : > { %v1734_v61 = vpop.f32.mrf.mxu3 }
  0xef   : > { %981 = vst [vmem:[%s1638_s20 + $0x38] sm:$0xff] %v949_v58  ;;  %v1006_v5 = vadd.f32 %v1644_v24, %v942_v59  ;;  %v1044_v3 = vmul.f32 %v942_v59, %v942_v59  ;;  %v1051_v42 = vmul.f32 %v949_v58, %v949_v58 }
  0xf0   : > { %v769_v2 = vpop.f32.mrf.mxu2  ;;  %v350_v4 = vpop.f32.mrf.mxu0  ;;  %974 = vst [vmem:[%s1638_s20] sm:$0xff] %v942_v59 }
  0xf1   : > { %v504_v7 = vpop.f32.mrf.mxu1  ;;  %v1007_v10 = vadd.f32 %v1006_v5, %v1658_v38  ;;  %v1076_v11 = vadd.f32 %v1045_v62, %v1044_v3  ;;  %v770_v16 = vadd.f32 %v769_v2, %v651_v12  ;;  %v604_v27 = vrot.slane %v350_v4, 7 }
  0xf2   : > { %v854_v13 = vrot.slane %v504_v7, 1 }
  0xf3   : > { %v1008_v24 = vadd.f32 %v1007_v10, %v1671_v53  ;;  %v1077_v17 = vadd.f32 %v1076_v11, %v1046_v19 }
  0xf4   : > { %v900_v21 = vsel %vm877_vm1, %v853_v54, %v854_v13 }
  0xf5   : > { %v950_v38 = vadd.f32 %v900_v21, %v770_v16  ;;  %v1009_v23 = vadd.f32 %v1008_v24, %v1685_v8  ;;  %v1078_v25 = vadd.f32 %v1077_v17, %v1047_v14  ;;  %v650_v8 = vsel %vm627_vm0, %v603_v60, %v604_v27 }
  0xf6   : > { %v1754_v28 = vpop.f32.mrf.mxu3 }
  0xf7   : > { %982 = vst [vmem:[%s1638_s20 + $0x40] sm:$0xff] %v950_v38  ;;  %v1010_v53 = vadd.f32 %v1009_v23, %v1698_v26  ;;  %v1079_v32 = vadd.f32 %v1078_v25, %v1048_v22  ;;  %v1052_v49 = vmul.f32 %v950_v38, %v950_v38 }
  0xf8   : > { %v771_v30 = vpop.f32.mrf.mxu2  ;;  %v353_v33 = vpop.f32.mrf.mxu0 }
  0xf9   : > { %v507_v35 = vpop.f32.mrf.mxu1  ;;  %v1011_v36 = vadd.f32 %v1010_v53, %v948_v39  ;;  %v1080_v37 = vadd.f32 %v1079_v32, %v1049_v29  ;;  %v772_v43 = vadd.f32 %v771_v30, %v650_v8  ;;  %v605_v55 = vrot.slane %v353_v33, 7 }
  0xfa   : > { %v855_v40 = vrot.slane %v507_v35, 1 }
  0xfb   : > { %v1012_v44 = vadd.f32 %v1011_v36, %v949_v58  ;;  %v1081_v45 = vadd.f32 %v1080_v37, %v1050_v47  ;;  %v649_v62 = vsel %vm627_vm0, %v604_v27, %v605_v55 }
  0xfc   : > { %v899_v46 = vsel %vm877_vm1, %v854_v13, %v855_v40 }
  0xfd   : > { %v951_v26 = vadd.f32 %v899_v46, %v772_v43  ;;  %v1013_v52 = vadd.f32 %v1012_v44, %v950_v38  ;;  %v1082_v54 = vadd.f32 %v1081_v45, %v1051_v42 }
  0xfe   : > { %v1764_v56 = vpop.f32.mrf.mxu3 }
  0xff   : > { %v1053_v39 = vmul.f32 %v951_v26, %v951_v26  ;;  %983 = vst [vmem:[%s1638_s20 + $0x48] sm:$0xff] %v951_v26  ;;  %v1083_v15 = vadd.f32 %v1082_v54, %v1052_v49  ;;  %v1014_v57 = vadd.f32 %v1013_v52, %v951_v26 }
 0x100   : > { %v774_v63 = vpop.f32.mrf.mxu2  ;;  %v355_v59 = vpop.f32.mrf.mxu0 }
 0x101   : > { %v509_v60 = vpop.f32.mrf.mxu1  ;;  %v1084_v58 = vadd.f32 %v1083_v15, %v1053_v39  ;;  %v775_v5 = vadd.f32 %v774_v63, %v649_v62  ;;  %v606_v19 = vrot.slane %v355_v59, 7 }
 0x102   : > { %v856_v2 = vrot.slane %v509_v60, 1 }
 0x103   : > { %v648_v24 = vsel %vm627_vm0, %v605_v55, %v606_v19 }
 0x104   : > { %v898_v3 = vsel %vm877_vm1, %v855_v40, %v856_v2 }
 0x105   : > { %v952_v4 = vadd.f32 %v898_v3, %v775_v5 }
 0x106   : > { %v1771_v7 = vpop.f32.mrf.mxu3 }
 0x107   : > { %v1054_v10 = vmul.f32 %v952_v4, %v952_v4  ;;  %984 = vst [vmem:[%s1638_s20 + $0x50] sm:$0xff] %v952_v4  ;;  %v1015_v12 = vadd.f32 %v1014_v57, %v952_v4 }
 0x108   : > { %v776_v11 = vpop.f32.mrf.mxu2  ;;  %v358_v13 = vpop.f32.mrf.mxu0 }
 0x109   : > { %v512_v14 = vpop.f32.mrf.mxu1  ;;  %v1085_v16 = vadd.f32 %v1084_v58, %v1054_v10  ;;  %v777_v21 = vadd.f32 %v776_v11, %v648_v24  ;;  %v607_v23 = vrot.slane %v358_v13, 7  ;;  %v1813_v13 = vadd.s32 120, %v1613_v6 }
 0x10a   : > { %v857_v17 = vrot.slane %v512_v14, 1 }
 0x10b   : > { %v647_v47 = vsel %vm627_vm0, %v606_v19, %v607_v23  ;;  %vm844_vm3 = vcmp.eq.s32.totalorder %v1813_v13, 127 }
 0x10c   : > { %v897_v22 = vsel %vm877_vm1, %v856_v2, %v857_v17 }
 0x10d   : > { %v953_v38 = vadd.f32 %v897_v22, %v777_v21 }
 0x10e   : > { %v1778_v25 = vpop.f32.mrf.mxu3 }
 0x10f   : > { %v1055_v27 = vmul.f32 %v953_v38, %v953_v38  ;;  %985 = vst [vmem:[%s1638_s20 + $0x58] sm:$0xff] %v953_v38  ;;  %v1016_v30 = vadd.f32 %v1015_v12, %v953_v38 }
 0x110   : > { %v779_v29 = vpop.f32.mrf.mxu2  ;;  %v360_v53 = vpop.f32.mrf.mxu0 }
 0x111   : > { %v514_v32 = vpop.f32.mrf.mxu1  ;;  %v1086_v33 = vadd.f32 %v1085_v16, %v1055_v27  ;;  %v780_v36 = vadd.f32 %v779_v29, %v647_v47  ;;  %v608_v40 = vrot.slane %v360_v53, 7 }
 0x112   : > { %v858_v35 = vrot.slane %v514_v32, 1 }
 0x113   : > { %v646_v52 = vsel %vm627_vm0, %v607_v23, %v608_v40 }
 0x114   : > { %v896_v37 = vsel %vm877_vm1, %v857_v17, %v858_v35 }
 0x115   : > { %v954_v8 = vadd.f32 %v896_v37, %v780_v36  ;;  %v870_v36 = vrot.slane %v1754_v28, 1  ;;  %v871_v37 = vrot.slane %v1764_v56, 1 }
 0x116   : > { %v1785_v42 = vpop.f32.mrf.mxu3 }
 0x117   : > { %v1056_v43 = vmul.f32 %v954_v8, %v954_v8  ;;  %986 = vst [vmem:[%s1638_s20 + $0x60] sm:$0xff] %v954_v8  ;;  %v1788_v45 = vadd.f32 %v1016_v30, %v954_v8 }
 0x118   : > { %v781_v44 = vpop.f32.mrf.mxu2  ;;  %v363_v46 = vpop.f32.mrf.mxu0 }
 0x119   : > { %v517_v49 = vpop.f32.mrf.mxu1  ;;  %v1790_v26 = vadd.f32 %v1086_v33, %v1056_v43  ;;  %v782_v55 = vadd.f32 %v781_v44, %v646_v52  ;;  %v609_v15 = vrot.slane %v363_v46, 7  ;;  %v883_v52 = vsel %vm877_vm1, %v870_v36, %v871_v37 }
 0x11a   : > { %v859_v54 = vrot.slane %v517_v49, 1 }
 0x11b   : > { %v645_v62 = vsel %vm627_vm0, %v608_v40, %v609_v15 }
 0x11c   : > { %v895_v39 = vsel %vm877_vm1, %v858_v35, %v859_v54 }
 0x11d   : > { %v1796_v63 = vadd.f32 %v895_v39, %v782_v55 }
 0x11e   : > { %v1798_v57 = vpop.f32.mrf.mxu3 }
 0x11f   : > { %987 = vst [vmem:[%s1638_s20 + $0x68] sm:$0xff] %v1796_v63 }
 0x120   : > { %v784_v59 = vpop.f32.mrf.mxu2  ;;  %v365_v60 = vpop.f32.mrf.mxu0 }
 0x121   : > { %v519_v58 = vpop.f32.mrf.mxu1  ;;  %v785_v5 = vadd.f32 %v784_v59, %v645_v62  ;;  %v610_v10 = vrot.slane %v365_v60, 7  ;;  %v872_v60 = vrot.slane %v1771_v7, 1 }
 0x122   : > { %v860_v2 = vrot.slane %v519_v58, 1 }
 0x123   : > { %v644_v24 = vsel %vm627_vm0, %v609_v15, %v610_v10 }
 0x124   : > { %v894_v3 = vsel %vm877_vm1, %v859_v54, %v860_v2 }
 0x125   : > { %v1806_v4 = vadd.f32 %v894_v3, %v785_v5 }
 0x126   : > { %v1808_v19 = vpop.f32.mrf.mxu3 }
 0x127   : > { %988 = vst [vmem:[%s1638_s20 + $0x70] sm:$0xff] %v1806_v4 }
 0x128   : > { %v786_v11 = vpop.f32.mrf.mxu2  ;;  %v368_v12 = vpop.f32.mrf.mxu0 }
 0x129   : > { %v522_v14 = vpop.f32.mrf.mxu1  ;;  %v611_v17 = vrot.slane %v368_v12, 7  ;;  %v787_v21 = vadd.f32 %v786_v11, %v644_v24 }
 0x12a   : > { %v861_v16 = vrot.slane %v522_v14, 1 }
 0x12b   : > { %v643_v29 = vsel %vm627_vm0, %v610_v10, %v611_v17  ;;  %v882_v10 = vsel %vm877_vm1, %v871_v37, %v872_v60 }
 0x12c   : > { %v893_v22 = vsel %vm877_vm1, %v860_v2, %v861_v16  ;;  %v676_v33 = vsel %vm579_vm2, 0.0, %v643_v29 }
 0x12d   : > { %v925_v38 = vsel %vm844_vm3, 0.0, %v893_v22 }
 0x12e   : > { %v1822_v23 = vpop.f32.mrf.mxu3  ;;  %v1824_v27 = vadd.f32 %v925_v38, %v787_v21 }
 0x130   : > { %v789_v30 = vpop.f32.mrf.mxu2  ;;  %v370_v53 = vpop.f32.mrf.mxu0  ;;  %989 = vst [vmem:[%s1638_s20 + $0x78] sm:$0xff] %v1824_v27 }
 0x131   : > { %v524_v32 = vpop.f32.mrf.mxu1  ;;  %v790_v35 = vadd.f32 %v789_v30, %v676_v33  ;;  %v612_v43 = vrot.slane %v370_v53, 7 }
 0x132   : > { %v862_v47 = vrot.slane %v524_v32, 1 }
 0x133   : > { %v642_v39 = vsel %vm627_vm0, %v611_v17, %v612_v43  ;;  %v873_v17 = vrot.slane %v1778_v25, 1 }
 0x134   : > { %v892_v8 = vsel %vm877_vm1, %v861_v16, %v862_v47 }
 0x135   : > { %v1836_v40 = vadd.f32 %v892_v8, %v790_v35  ;;  %v881_v53 = vsel %vm877_vm1, %v872_v60, %v873_v17  ;;  %v874_v8 = vrot.slane %v1785_v42, 1 }
 0x136   : > { %v811_v44 = vpop.f32.mrf.mxu3 }
 0x137   : > { %990 = vst [vmem:[%s1638_s20 + $0x80] sm:$0xff] %v1836_v40  ;;  %v812_v49 = vadd.f32 %v811_v44, %v1624_v18 }
 0x138   : > { %v791_v46 = vpop.f32.mrf.mxu2  ;;  %v373_v54 = vpop.f32.mrf.mxu0 }
 0x139   : > { %v1845_v56 = vadd.f32 %v883_v52, %v812_v49  ;;  %v527_v55 = vpop.f32.mrf.mxu1  ;;  %v792_v59 = vadd.f32 %v791_v46, %v642_v39  ;;  %v613_v62 = vrot.slane %v373_v54, 7  ;;  %v880_v54 = vsel %vm877_vm1, %v873_v17, %v874_v8 }
 0x13a   : > { %v863_v15 = vrot.slane %v527_v55, 1 }
 0x13b   : > { %999 = vst [vmem:[%s1638_s20 + $0xc8] sm:$0xff] %v1845_v56  ;;  %v641_v14 = vsel %vm627_vm0, %v612_v43, %v613_v62 }
 0x13c   : > { %v891_v18 = vsel %vm877_vm1, %v862_v47, %v863_v15 }
 0x13d   : > { %v1854_v58 = vadd.f32 %v891_v18, %v792_v59  ;;  %v875_v18 = vrot.slane %v1798_v57, 1 }
 0x13e   : > { %v814_v2 = vpop.f32.mrf.mxu3 }
 0x13f   : > { %991 = vst [vmem:[%s1638_s20 + $0x88] sm:$0xff] %v1854_v58  ;;  %v815_v3 = vadd.f32 %v814_v2, %v1650_v31  ;;  %v879_v57 = vsel %vm877_vm1, %v874_v8, %v875_v18 }
 0x140   : > { %v794_v5 = vpop.f32.mrf.mxu2  ;;  %v375_v11 = vpop.f32.mrf.mxu0 }
 0x141   : > { %v1861_v12 = vadd.f32 %v882_v10, %v815_v3  ;;  %v529_v7 = vpop.f32.mrf.mxu1  ;;  %v795_v24 = vadd.f32 %v794_v5, %v641_v14  ;;  %v614_v22 = vrot.slane %v375_v11, 7  ;;  %v1058_v10 = vmul.f32 %v1806_v4, %v1806_v4 }
 0x142   : > { %v864_v16 = vrot.slane %v529_v7, 1 }
 0x143   : > { %1000 = vst [vmem:[%s1638_s20 + $0xd0] sm:$0xff] %v1861_v12  ;;  %v640_v47 = vsel %vm627_vm0, %v613_v62, %v614_v22  ;;  %v1057_v62 = vmul.f32 %v1796_v63, %v1796_v63  ;;  %v1070_v6 = vmul.f32 %v1861_v12, %v1861_v12 }
 0x144   : > { %v890_v31 = vsel %vm877_vm1, %v863_v15, %v864_v16 }
 0x145   : > { %v1870_v21 = vadd.f32 %v890_v31, %v795_v24  ;;  %v1059_v31 = vmul.f32 %v1824_v27, %v1824_v27 }
 0x146   : > { %v816_v38 = vpop.f32.mrf.mxu3 }
 0x147   : > { %992 = vst [vmem:[%s1638_s20 + $0x90] sm:$0xff] %v1870_v21  ;;  %v817_v30 = vadd.f32 %v816_v38, %v1664_v48 }
 0x148   : > { %v796_v29 = vpop.f32.mrf.mxu2  ;;  %v378_v32 = vpop.f32.mrf.mxu0 }
 0x149   : > { %v1877_v33 = vadd.f32 %v881_v53, %v817_v30  ;;  %v532_v25 = vpop.f32.mrf.mxu1  ;;  %v797_v37 = vadd.f32 %v796_v29, %v640_v47  ;;  %v615_v44 = vrot.slane %v378_v32, 7  ;;  %v1060_v30 = vmul.f32 %v1836_v40, %v1836_v40 }
 0x14a   : > { %v865_v35 = vrot.slane %v532_v25, 1 }
 0x14b   : > { %1001 = vst [vmem:[%s1638_s20 + $0xd8] sm:$0xff] %v1877_v33  ;;  %v639_v15 = vsel %vm627_vm0, %v614_v22, %v615_v44  ;;  %v1088_v22 = vadd.f32 %v1790_v26, %v1057_v62  ;;  %v1061_v26 = vmul.f32 %v1854_v58, %v1854_v58 }
 0x14c   : > { %v889_v48 = vsel %vm877_vm1, %v864_v16, %v865_v35  ;;  %v1018_v16 = vadd.f32 %v1788_v45, %v1796_v63 }
 0x14d   : > { %v1886_v43 = vadd.f32 %v889_v48, %v797_v37  ;;  %v1089_v45 = vadd.f32 %v1088_v22, %v1058_v10  ;;  %v1062_v48 = vmul.f32 %v1870_v21, %v1870_v21 }
 0x14e   : > { %v819_v46 = vpop.f32.mrf.mxu3 }
 0x14f   : > { %993 = vst [vmem:[%s1638_s20 + $0x98] sm:$0xff] %v1886_v43  ;;  %v820_v52 = vadd.f32 %v819_v46, %v1677_v41  ;;  %v1090_v47 = vadd.f32 %v1089_v45, %v1059_v31 }
 0x150   : > { %v799_v49 = vpop.f32.mrf.mxu2  ;;  %v380_v55 = vpop.f32.mrf.mxu0 }
 0x151   : > { %v1893_v39 = vadd.f32 %v880_v54, %v820_v52  ;;  %v534_v42 = vpop.f32.mrf.mxu1  ;;  %v800_v60 = vadd.f32 %v799_v49, %v639_v15  ;;  %v616_v5 = vrot.slane %v380_v55, 7 }
 0x152   : > { %v866_v59 = vrot.slane %v534_v42, 1 }
 0x153   : > { %1002 = vst [vmem:[%s1638_s20 + $0xe0] sm:$0xff] %v1893_v39  ;;  %v638_v38 = vsel %vm627_vm0, %v615_v44, %v616_v5 }
 0x154   : > { %v888_v41 = vsel %vm877_vm1, %v865_v35, %v866_v59  ;;  %v876_v35 = vrot.slane %v1808_v19, 1  ;;  %v869_v19 = vrot.slane %v1734_v61, 1 }
 0x155   : > { %v962_v2 = vadd.f32 %v888_v41, %v800_v60 }
 0x156   : > { %v821_v3 = vpop.f32.mrf.mxu3  ;;  %v878_v49 = vsel %vm877_vm1, %v875_v18, %v876_v35  ;;  %v884_v1 = vsel %vm877_vm1, %v869_v19, %v870_v36 }
 0x157   : > { %994 = vst [vmem:[%s1638_s20 + $0xa0] sm:$0xff] %v962_v2  ;;  %v822_v7 = vadd.f32 %v821_v3, %v1691_v20  ;;  %v1019_v20 = vadd.f32 %v1018_v16, %v1806_v4  ;;  %v1064_v3 = vmul.f32 %v962_v2, %v962_v2 }
 0x158   : > { %v801_v11 = vpop.f32.mrf.mxu2  ;;  %v383_v14 = vpop.f32.mrf.mxu0 }
 0x159   : > { %v1912_v24 = vadd.f32 %v879_v57, %v822_v7  ;;  %v537_v17 = vpop.f32.mrf.mxu1  ;;  %v802_v53 = vadd.f32 %v801_v11, %v638_v38  ;;  %v1020_v32 = vadd.f32 %v1019_v20, %v1824_v27  ;;  %v617_v4 = vrot.slane %v383_v14, 7 }
 0x15a   : > { %v867_v29 = vrot.slane %v537_v17, 1  ;;  %v1091_v27 = vadd.f32 %v1090_v47, %v1060_v30 }
 0x15b   : > { %1003 = vst [vmem:[%s1638_s20 + $0xe8] sm:$0xff] %v1912_v24  ;;  %v1021_v8 = vadd.f32 %v1020_v32, %v1836_v40  ;;  %v1069_v32 = vmul.f32 %v1845_v56, %v1845_v56 }
 0x15c   : > { %v887_v63 = vsel %vm877_vm1, %v866_v59, %v867_v29  ;;  %v1092_v15 = vadd.f32 %v1091_v27, %v1061_v26  ;;  %v1063_v59 = vmul.f32 %v1886_v43, %v1886_v43 }
 0x15d   : > { %v963_v25 = vadd.f32 %v887_v63, %v802_v53  ;;  %v1022_v54 = vadd.f32 %v1021_v8, %v1854_v58  ;;  %v909_v58 = vsel %vm877_vm1, %v876_v35, %v845_v51 }
 0x15e   : > { %v824_v37 = vpop.f32.mrf.mxu3  ;;  %v1093_v62 = vadd.f32 %v1092_v15, %v1062_v48  ;;  %v941_v28 = vsel %vm844_vm3, 0.0, %v909_v58  ;;  %v1072_v48 = vmul.f32 %v1893_v39, %v1893_v39 }
 0x15f   : > { %995 = vst [vmem:[%s1638_s20 + $0xa8] sm:$0xff] %v963_v25  ;;  %v825_v46 = vadd.f32 %v824_v37, %v1704_v34  ;;  %v637_v34 = vsel %vm627_vm0, %v616_v5, %v617_v4  ;;  %v1023_v41 = vadd.f32 %v1022_v54, %v1870_v21  ;;  %v1065_v0 = vmul.f32 %v963_v25, %v963_v25 }
 0x160   : > { %v804_v44 = vpop.f32.mrf.mxu2  ;;  %v385_v52 = vpop.f32.mrf.mxu0  ;;  %v1094_v57 = vadd.f32 %v1093_v62, %v1063_v59 }
 0x161   : > { %v1939_v55 = vadd.f32 %v878_v49, %v825_v46  ;;  %v618_v40 = vrot.slane %v385_v52, 7  ;;  %v539_v42 = vpop.f32.mrf.mxu1  ;;  %v805_v18 = vadd.f32 %v804_v44, %v637_v34  ;;  %v1024_v10 = vadd.f32 %v1023_v41, %v1886_v43 }
 0x162   : > { %v868_v60 = vrot.slane %v539_v42, 1  ;;  %v1095_v31 = vadd.f32 %v1094_v57, %v1064_v3  ;;  %v1073_v46 = vmul.f32 %v1912_v24, %v1912_v24 }
 0x163   : > { %1004 = vst [vmem:[%s1638_s20 + $0xf0] sm:$0xff] %v1939_v55  ;;  %v635_v61 = vsel %vm627_vm0, %v618_v40, %v619_v9  ;;  %v1025_v51 = vadd.f32 %v1024_v10, %v962_v2  ;;  %v1074_v49 = vmul.f32 %v1939_v55, %v1939_v55 }
 0x164   : > { %v810_v5 = vadd.f32 %v1822_v23, %v635_v61  ;;  %v886_v21 = vsel %vm877_vm1, %v867_v29, %v868_v60  ;;  %v636_v23 = vsel %vm627_vm0, %v617_v4, %v618_v40  ;;  %v885_v2 = vsel %vm877_vm1, %v868_v60, %v869_v19 }
 0x165   : > { %v964_v9 = vadd.f32 %v886_v21, %v805_v18  ;;  %v1026_v17 = vadd.f32 %v1025_v51, %v963_v25  ;;  %v1096_v20 = vadd.f32 %v1095_v31, %v1065_v0  ;;  %v1071_v4 = vmul.f32 %v1877_v33, %v1877_v33 }
 0x166   : > { %v966_v11 = vadd.f32 %v884_v1, %v810_v5  ;;  %v826_v7 = vpop.f32.mrf.mxu3 }
 0x167   : > { %996 = vst [vmem:[%s1638_s20 + $0xb0] sm:$0xff] %v964_v9  ;;  %v827_v43 = vadd.f32 %v826_v7, %v1718_v50  ;;  %v1066_v36 = vmul.f32 %v964_v9, %v964_v9  ;;  %v1027_v29 = vadd.f32 %v1026_v17, %v964_v9 }
 0x168   : > { %v806_v14 = vpop.f32.mrf.mxu2  ;;  %998 = vst [vmem:[%s1638_s20 + $0xc0] sm:$0xff] %v966_v11  ;;  %v1068_v45 = vmul.f32 %v966_v11, %v966_v11 }
 0x169   : > { %v807_v16 = vadd.f32 %v806_v14, %v636_v23  ;;  %v973_v22 = vadd.f32 %v941_v28, %v827_v43  ;;  %v1097_v50 = vadd.f32 %v1096_v20, %v1066_v36 }
 0x16b   : > { %v965_v38 = vadd.f32 %v885_v2, %v807_v16  ;;  %1005 = vst [vmem:[%s1638_s20 + $0xf8] sm:$0xff] %v973_v22  ;;  %v1075_v19 = vmul.f32 %v973_v22, %v973_v22 }
 0x16d   : > { %997 = vst [vmem:[%s1638_s20 + $0xb8] sm:$0xff] %v965_v38  ;;  %v1067_v30 = vmul.f32 %v965_v38, %v965_v38  ;;  %v1028_v53 = vadd.f32 %v1027_v29, %v965_v38 }
 0x16f   : > { %v1029_v13 = vadd.f32 %v1028_v53, %v966_v11  ;;  %v1098_v63 = vadd.f32 %v1097_v50, %v1067_v30 }
 0x171   : > { %v1030_v26 = vadd.f32 %v1029_v13, %v1845_v56  ;;  %v1099_v25 = vadd.f32 %v1098_v63, %v1068_v45 }
 0x173   : > { %v1031_v47 = vadd.f32 %v1030_v26, %v1861_v12  ;;  %v1100_v35 = vadd.f32 %v1099_v25, %v1069_v32 }
 0x175   : > { %v1032_v37 = vadd.f32 %v1031_v47, %v1877_v33  ;;  %v1101_v8 = vadd.f32 %v1100_v35, %v1070_v6 }
 0x177   : > { %v1033_v56 = vadd.f32 %v1032_v37, %v1893_v39  ;;  %v1102_v44 = vadd.f32 %v1101_v8, %v1071_v4 }
 0x179   : > { %v1034_v27 = vadd.f32 %v1033_v56, %v1912_v24  ;;  %v1103_v12 = vadd.f32 %v1102_v44, %v1072_v48 }
 0x17b   : > { %v1035_v52 = vadd.f32 %v1034_v27, %v1939_v55  ;;  %v1104_v33 = vadd.f32 %v1103_v12, %v1073_v46 }
 0x17d   : > { %v1036_v54 = vadd.f32 %v1035_v52, %v973_v22  ;;  %v1105_v40 = vadd.f32 %v1104_v33, %v1074_v49 }
 0x17f   : > { %v1037_v42 = vrot.slane %v1036_v54, 4  ;;  %v1106_v15 = vadd.f32 %v1105_v40, %v1075_v19 }
 0x181   : > { %v1038_v39 = vadd.f32 %v1037_v42, %v1036_v54  ;;  %v1107_v59 = vrot.slane %v1106_v15, 4 }
 0x183   : > { %v1039_v34 = vrot.slane %v1038_v39, 2  ;;  %v1108_v60 = vadd.f32 %v1107_v59, %v1106_v15 }
 0x185   : > { %v1040_v24 = vadd.f32 %v1039_v34, %v1038_v39  ;;  %v1109_v41 = vrot.slane %v1108_v60, 2 }
 0x187   : > { %v1041_v18 = vrot.slane %v1040_v24, 1  ;;  %v1110_v61 = vadd.f32 %v1109_v41, %v1108_v60 }
 0x189   : > { %v1042_v55 = vadd.f32 %v1041_v18, %v1040_v24  ;;  %v1111_v58 = vrot.slane %v1110_v61, 1 }
 0x18b   : > { %1043 = vst [vmem:[%s189_s23] sm:$0x1] %v1042_v55  ;;  %v1112_v62 = vadd.f32 %v1111_v58, %v1110_v61 }
 0x18d   : > { %1113 = vst [vmem:[%s189_s23 + $0x1] sm:$0x1] %v1112_v62 }
 0x18e PF: > { %s14_s12 = sadd.s32 1, %s1409_s12  }
 0x18f   : > { %p11_p5 = scmp.ge.s32.totalorder %s14_s12, 6  }
 0x191   :  { %13 = sbr.rel (!%p11_p5) target bundleno = 1 (0x1), region = 72 }

// kernel: basic_block_forward.4
= control target key start
LH: loop header
LB: loop body
LE: loop exit
PB: predicated region body
PF: predicated region fallthrough
CT: control target
= control target key end

     0   :  { %s1601_s18 = smov 0   ;;  %s2269_s0 = inlined_call_operand.vmem [shape: f32[8,128,128], index: 0, kind: input, shape index: {}]   ;;  %s2270_s1 = inlined_call_operand.vmem [shape: f32[1,128], index: 1, kind: input, shape index: {}]   ;;  %s2271_s2 = inlined_call_operand.vmem [shape: f32[1,128], index: 2, kind: input, shape index: {}]   ;;  %s2272_s3 = inlined_call_operand.vmem [shape: bf16[3,128,128], index: 3, kind: input, shape index: {}]   ;;  %s2273_s4 = inlined_call_operand.vmem [shape: f32[8,128,128], index: 4, kind: output, shape index: {0}]   ;;  %s2274_s5 = inlined_call_operand.vmem [shape: f32[4,2,128], index: 5, kind: output, shape index: {1}]  }
   0x1 LB: > { %s1607_s19 = sadd.s32 4294967295, %s1569_s18   ;;  %p1365_p0 = scmp.ge.s32.totalorder %s1569_s18, 1  ;;  %s1569_s18 = sphi %s1601_s18, %s16_s18  }
   0x2   : > { %p192_p1 = scmp.lt.s32.totalorder %s1569_s18, 5 }
   0x4   : > { %p193_p2 = pnand %p1365_p0, %p192_p1 }
   0x5   : > { %s1366_s26 = sshll.u32 (!%p193_p2), %s1607_s19, 1  ;;  %p240_p4 = scmp.lt.s32.totalorder (!%p193_p2), %s1607_s19, 3 }
   0x6   : > { %196 = sbr.rel (%p193_p2) target bundleno = 398 (0x18e), region = 36  ;;  %p227_p3 = scmp.lt.s32.totalorder (!%p193_p2), %s1366_s26, 7 }
   0xb   : > { %v1520_v0 = vld [vmem:[%s2272_s3 + $0x38] sm:$0xff]  ;;  %v1519_v3 = vld [vmem:[%s2272_s3 + $0x30] sm:$0xff]  ;;  %s2276_s26 = smov (!%p227_p3, %s1366_s26), 7  ;;  %v1518_v6 = vld [vmem:[%s2272_s3 + $0x28] sm:$0xff]  ;;  %s2278_s19 = smov (!%p240_p4, %s1607_s19), 3 }
   0xc   : > { %v1617_v1 = vld [vmem:[%s2272_s3 + $0xb8] sm:$0xff]  ;;  %477 = vmatpush.bf16.msra.mxu0 %v1520_v0  ;;  %1529 = vmatpush.bf16.msra.mxu3 %v1520_v0  ;;  %v1633_v4 = vld [vmem:[%s2272_s3 + $0xb0] sm:$0xff]  ;;  %v1650_v7 = vld [vmem:[%s2272_s3 + $0xa8] sm:$0xff]  ;;  %s1503_s14 = sshll.u32 %s2276_s26, 7  ;;  %s1372_s26 = sshll.u32 %s2278_s19, 1 }
   0xd   : > { %v1622_v2 = vld [vmem:[%s2272_s3 + $0x78] sm:$0xff]  ;;  %631 = vmatpush.bf16.msra.mxu1 %v1617_v1  ;;  %v1638_v5 = vld [vmem:[%s2272_s3 + $0x70] sm:$0xff]  ;;  %v1655_v8 = vld [vmem:[%s2272_s3 + $0x68] sm:$0xff]  ;;  %s1666_s21 = scalar_lea.vmem %s2269_s0, %s1503_s14  ;;  %s1902_s12 = scalar_lea.vmem %s2273_s4, %s1503_s14 }
   0xe   : > { %898 = vmatpush.bf16.msra.mxu2 %v1622_v2  ;;  %v1517_v9 = vld [vmem:[%s2272_s3 + $0x20] sm:$0xff]  ;;  %v1516_v12 = vld [vmem:[%s2272_s3 + $0x18] sm:$0xff]  ;;  %v245_v15 = vld [vmem:[%s1666_s21 + $0x8] sm:$0xff]  ;;  %s243_s13 = scalar_lea.vmem %s2274_s5, %s1372_s26 }
   0xf   : > { %v1673_v10 = vld [vmem:[%s2272_s3 + $0xa0] sm:$0xff]  ;;  %v269_v17 = vld [vmem:[%s1666_s21 + $0xc8] sm:$0xff]  ;;  %v1697_v18 = vld [vmem:[%s2272_s3 + $0x98] sm:$0xff] }
  0x10   : > { %478 = vmatpush.bf16.msra.mxu0 %v1519_v3  ;;  %1530 = vmatpush.bf16.msra.mxu3 %v1519_v3  ;;  %v1678_v11 = vld [vmem:[%s2272_s3 + $0x60] sm:$0xff]  ;;  %v1702_v19 = vld [vmem:[%s2272_s3 + $0x58] sm:$0xff]  ;;  %v1515_v25 = vld [vmem:[%s2272_s3 + $0x10] sm:$0xff] }
  0x11   : > { %632 = vmatpush.bf16.msra.mxu1 %v1633_v4  ;;  %v244_v13 = vld [vmem:[%s1666_s21] sm:$0xff]  ;;  %v1721_v26 = vld [vmem:[%s2272_s3 + $0x90] sm:$0xff]  ;;  %v1514_v32 = vld [vmem:[%s2272_s3 + $0x8] sm:$0xff] }
  0x12   : > { %899 = vmatpush.bf16.msra.mxu2 %v1638_v5  ;;  %v1687_v14 = vld [vmem:[%s2270_s1] ss:$0 sm:$0xff]  ;;  %v1726_v27 = vld [vmem:[%s2272_s3 + $0x50] sm:$0xff]  ;;  %v1740_v33 = vld [vmem:[%s2272_s3 + $0x88] sm:$0xff] }
  0x13   : > { %v268_v16 = vld [vmem:[%s1666_s21 + $0xc0] sm:$0xff]  ;;  %v280_v20 = vmul.f32 %v1687_v14, %v244_v13  ;;  %v281_v21 = vmul.f32 %v1687_v14, %v245_v15  ;;  %v305_v24 = vmul.f32 %v1687_v14, %v269_v17  ;;  %v1745_v34 = vld [vmem:[%s2272_s3 + $0x48] sm:$0xff]  ;;  %v246_v44 = vld [vmem:[%s1666_s21 + $0x10] sm:$0xff] }
  0x14   : > { %479 = vmatpush.bf16.msra.mxu0 %v1518_v6  ;;  %1531 = vmatpush.bf16.msra.mxu3 %v1518_v6  ;;  %v1709_v22 = vld [vmem:[%s2271_s2] ss:$0 sm:$0xff]  ;;  %v304_v23 = vmul.f32 %v1687_v14, %v268_v16  ;;  %v247_v45 = vld [vmem:[%s1666_s21 + $0x18] sm:$0xff]  ;;  %v270_v46 = vld [vmem:[%s1666_s21 + $0xd0] sm:$0xff]  ;;  %v282_v48 = vmul.f32 %v1687_v14, %v246_v44 }
  0x15   : > { %633 = vmatpush.bf16.msra.mxu1 %v1650_v7  ;;  %v316_v28 = vadd.f32 %v1709_v22, %v280_v20  ;;  %v317_v29 = vadd.f32 %v1709_v22, %v281_v21  ;;  %v341_v31 = vadd.f32 %v1709_v22, %v305_v24  ;;  %v1513_v39 = vld [vmem:[%s2272_s3] sm:$0xff]  ;;  %v271_v47 = vld [vmem:[%s1666_s21 + $0xd8] sm:$0xff]  ;;  %v283_v49 = vmul.f32 %v1687_v14, %v247_v45  ;;  %v249_v63 = vld [vmem:[%s1666_s21 + $0x28] sm:$0xff] }
  0x16   : > { %900 = vmatpush.bf16.msra.mxu2 %v1655_v8  ;;  %v340_v30 = vadd.f32 %v1709_v22, %v304_v23  ;;  %v1521_v40 = vld [vmem:[%s2272_s3 + $0x80] sm:$0xff]  ;;  %v306_v50 = vmul.f32 %v1687_v14, %v270_v46  ;;  %v307_v51 = vmul.f32 %v1687_v14, %v271_v47  ;;  %v318_v52 = vadd.f32 %v1709_v22, %v282_v48  ;;  %v250_v23 = vld [vmem:[%s1666_s21 + $0x30] sm:$0xff]  ;;  %v251_v24 = vld [vmem:[%s1666_s21 + $0x38] sm:$0xff] }
  0x17   : > { %v348_v35 = vmax.f32 %v316_v28, 0.0  ;;  %v349_v36 = vmax.f32 %v317_v29, 0.0  ;;  %v373_v38 = vmax.f32 %v341_v31, 0.0  ;;  %v1758_v41 = vld [vmem:[%s2272_s3 + $0x40] sm:$0xff]  ;;  %v319_v53 = vadd.f32 %v1709_v22, %v283_v49  ;;  %v253_v44 = vld [vmem:[%s1666_s21 + $0x48] sm:$0xff]  ;;  %v254_v49 = vld [vmem:[%s1666_s21 + $0x50] sm:$0xff] }
  0x18   : > { %480 = vmatpush.bf16.msra.mxu0 %v1517_v9  ;;  %1532 = vmatpush.bf16.msra.mxu3 %v1517_v9  ;;  %v372_v37 = vmax.f32 %v340_v30, 0.0  ;;  %v342_v54 = vadd.f32 %v1709_v22, %v306_v50  ;;  %v343_v55 = vadd.f32 %v1709_v22, %v307_v51  ;;  %v350_v56 = vmax.f32 %v318_v52, 0.0  ;;  %v248_v62 = vld [vmem:[%s1666_s21 + $0x20] sm:$0xff]  ;;  %v255_v50 = vld [vmem:[%s1666_s21 + $0x58] sm:$0xff] }
  0x19   : > { %634 = vmatpush.bf16.msra.mxu1 %v1673_v10  ;;  %v380_v42 = vpack.c.bf16 %v349_v36, %v348_v35  ;;  %v351_v57 = vmax.f32 %v319_v53, 0.0  ;;  %v272_v0 = vld [vmem:[%s1666_s21 + $0xe0] sm:$0xff]  ;;  %v284_v3 = vmul.f32 %v1687_v14, %v248_v62  ;;  %v286_v28 = vmul.f32 %v1687_v14, %v250_v23 }
  0x1a   : > { %901 = vmatpush.bf16.msra.mxu2 %v1678_v11  ;;  %v1760_v43 = vpack.c.bf16 %v373_v38, %v372_v37  ;;  %v374_v58 = vmax.f32 %v342_v54, 0.0  ;;  %v375_v59 = vmax.f32 %v343_v55, 0.0  ;;  %v308_v6 = vmul.f32 %v1687_v14, %v272_v0  ;;  %v256_v55 = vld [vmem:[%s1666_s21 + $0x60] sm:$0xff] }
  0x1b   : > { %v381_v60 = vpack.c.bf16 %v351_v57, %v350_v56  ;;  %v320_v9 = vadd.f32 %v1709_v22, %v284_v3  ;;  %v287_v29 = vmul.f32 %v1687_v14, %v251_v24  ;;  %v289_v45 = vmul.f32 %v1687_v14, %v253_v44  ;;  %v257_v56 = vld [vmem:[%s1666_s21 + $0x68] sm:$0xff]  ;;  %v259_v3 = vld [vmem:[%s1666_s21 + $0x78] sm:$0xff] }
  0x1c   : > { %481 = vmatpush.bf16.msra.mxu0 %v1516_v12  ;;  %1533 = vmatpush.bf16.msra.mxu3 %v1516_v12  ;;  %v1780_v61 = vpack.c.bf16 %v375_v59, %v374_v58  ;;  %v344_v12 = vadd.f32 %v1709_v22, %v308_v6  ;;  %v291_v51 = vmul.f32 %v1687_v14, %v255_v50  ;;  %v264_v50 = vld [vmem:[%s1666_s21 + $0xa0] sm:$0xff] }
  0x1d   : > { %635 = vmatpush.bf16.msra.mxu1 %v1697_v18  ;;  %v352_v15 = vmax.f32 %v320_v9, 0.0  ;;  %v325_v46 = vadd.f32 %v1709_v22, %v289_v45  ;;  %v292_v57 = vmul.f32 %v1687_v14, %v256_v55  ;;  %v293_v58 = vmul.f32 %v1687_v14, %v257_v56 }
  0x1e   : > { %902 = vmatpush.bf16.msra.mxu2 %v1702_v19  ;;  %v376_v17 = vmax.f32 %v344_v12, 0.0  ;;  %v327_v52 = vadd.f32 %v1709_v22, %v291_v51  ;;  %v295_v6 = vmul.f32 %v1687_v14, %v259_v3  ;;  %v300_v55 = vmul.f32 %v1687_v14, %v264_v50 }
  0x1f   : > { %v328_v59 = vadd.f32 %v1709_v22, %v292_v57 }
  0x20   : > { %482 = vmatpush.bf16.msra.mxu0 %v1515_v25  ;;  %1534 = vmatpush.bf16.msra.mxu3 %v1515_v25  ;;  %v274_v25 = vld [vmem:[%s1666_s21 + $0xf0] sm:$0xff]  ;;  %v331_v9 = vadd.f32 %v1709_v22, %v295_v6 }
  0x21   : > { %636 = vmatpush.bf16.msra.mxu1 %v1721_v26  ;;  %v310_v30 = vmul.f32 %v1687_v14, %v274_v25  ;;  %v360_v62 = vmax.f32 %v328_v59, 0.0 }
  0x22   : > { %903 = vmatpush.bf16.msra.mxu2 %v1726_v27  ;;  %v363_v12 = vmax.f32 %v331_v9, 0.0 }
  0x24   : > { %483 = vmatpush.bf16.msra.mxu0 %v1514_v32  ;;  %1535 = vmatpush.bf16.msra.mxu3 %v1514_v32  ;;  %v323_v32 = vadd.f32 %v1709_v22, %v287_v29  ;;  %v262_v29 = vld [vmem:[%s1666_s21 + $0x90] sm:$0xff] }
  0x25   : > { %637 = vmatpush.bf16.msra.mxu1 %v1740_v33 }
  0x26   : > { %904 = vmatpush.bf16.msra.mxu2 %v1745_v34  ;;  %v355_v37 = vmax.f32 %v323_v32, 0.0 }
  0x28   : > { %484 = vmatpush.bf16.msra.mxu0 %v1513_v39  ;;  %1536 = vmatpush.bf16.msra.mxu3 %v1513_v39 }
  0x29   : > { %638 = vmatpush.bf16.msra.mxu1 %v1521_v40 }
  0x2a   : > { %905 = vmatpush.bf16.msra.mxu2 %v1758_v41 }
  0x2b   : > { %485 = vmatmul.bf16.vlgmr.msra.gmra.mxu0 %v380_v42  ;;  %545 = vmatmul.bf16.vlgmr.msra.gmra.mxu3 %v1760_v43 }
  0x2c   : > { %1537 = vmatpush.bf16.msrb.mxu3 %v1617_v1  ;;  %639 = vmatmul.bf16.vlgmr.msra.gmra.mxu1 %v380_v42  ;;  %v273_v1 = vld [vmem:[%s1666_s21 + $0xe8] sm:$0xff] }
  0x2d   : > { %906 = vmatmul.bf16.vlgmr.msra.gmra.mxu2 %v380_v42 }
  0x30   : > { %1538 = vmatpush.bf16.msrb.mxu3 %v1633_v4  ;;  %v285_v4 = vmul.f32 %v1687_v14, %v249_v63 }
  0x34   : > { %1539 = vmatpush.bf16.msrb.mxu3 %v1650_v7  ;;  %v309_v7 = vmul.f32 %v1687_v14, %v273_v1  ;;  %v258_v1 = vld [vmem:[%s1666_s21 + $0x70] sm:$0xff] }
  0x36   : > { %v345_v13 = vadd.f32 %v1709_v22, %v309_v7 }
  0x38   : > { %1540 = vmatpush.bf16.msrb.mxu3 %v1673_v10  ;;  %v321_v10 = vadd.f32 %v1709_v22, %v285_v4  ;;  %v294_v4 = vmul.f32 %v1687_v14, %v258_v1 }
  0x3a   : > { %v353_v16 = vmax.f32 %v321_v10, 0.0  ;;  %v330_v7 = vadd.f32 %v1709_v22, %v294_v4 }
  0x3b   : > { %490 = vmatmul.bf16.gmra.mxu0 %v381_v60  ;;  %550 = vmatmul.bf16.gmra.mxu3 %v1780_v61 }
  0x3c   : > { %1541 = vmatpush.bf16.msrb.mxu3 %v1697_v18  ;;  %644 = vmatmul.bf16.gmra.mxu1 %v381_v60  ;;  %v377_v18 = vmax.f32 %v345_v13, 0.0  ;;  %v382_v20 = vpack.c.bf16 %v353_v16, %v352_v15  ;;  %v362_v10 = vmax.f32 %v330_v7, 0.0  ;;  %v260_v15 = vld [vmem:[%s1666_s21 + $0x80] sm:$0xff]  ;;  %v261_v16 = vld [vmem:[%s1666_s21 + $0x88] sm:$0xff] }
  0x3d   : > { %911 = vmatmul.bf16.gmra.mxu2 %v381_v60  ;;  %v329_v60 = vadd.f32 %v1709_v22, %v293_v58 }
  0x3e   : > { %v1798_v21 = vpack.c.bf16 %v377_v18, %v376_v17  ;;  %v387_v13 = vpack.c.bf16 %v363_v12, %v362_v10  ;;  %v296_v17 = vmul.f32 %v1687_v14, %v260_v15  ;;  %v297_v18 = vmul.f32 %v1687_v14, %v261_v16 }
  0x3f   : > { %v361_v63 = vmax.f32 %v329_v60, 0.0 }
  0x40   : > { %1542 = vmatpush.bf16.msrb.mxu3 %v1721_v26  ;;  %v275_v26 = vld [vmem:[%s1666_s21 + $0xf8] sm:$0xff]  ;;  %v333_v23 = vadd.f32 %v1709_v22, %v297_v18 }
  0x41   : > { %v311_v31 = vmul.f32 %v1687_v14, %v275_v26  ;;  %v386_v0 = vpack.c.bf16 %v361_v63, %v360_v62  ;;  %v336_v63 = vadd.f32 %v1709_v22, %v300_v55 }
  0x42   : > { %v365_v25 = vmax.f32 %v333_v23, 0.0 }
  0x43   : > { %v347_v35 = vadd.f32 %v1709_v22, %v311_v31  ;;  %v368_v10 = vmax.f32 %v336_v63, 0.0 }
  0x44   : > { %1543 = vmatpush.bf16.msrb.mxu3 %v1740_v33  ;;  %v346_v33 = vadd.f32 %v1709_v22, %v310_v30  ;;  %v263_v30 = vld [vmem:[%s1666_s21 + $0x98] sm:$0xff] }
  0x45   : > { %v379_v39 = vmax.f32 %v347_v35, 0.0  ;;  %v299_v32 = vmul.f32 %v1687_v14, %v263_v30 }
  0x46   : > { %v378_v38 = vmax.f32 %v346_v33, 0.0 }
  0x48   : > { %1544 = vmatpush.bf16.msrb.mxu3 %v1521_v40  ;;  %v1817_v42 = vpack.c.bf16 %v379_v39, %v378_v38  ;;  %v335_v38 = vadd.f32 %v1709_v22, %v299_v32 }
  0x4a   : > { %v367_v44 = vmax.f32 %v335_v38, 0.0 }
  0x4b   : > { %495 = vmatmul.bf16.gmra.mxu0 %v382_v20  ;;  %555 = vmatmul.bf16.gmra.mxu3 %v1798_v21 }
  0x4c   : > { %1545 = vmatpush.bf16.msra.mxu3 %v1622_v2  ;;  %649 = vmatmul.bf16.gmra.mxu1 %v382_v20  ;;  %v322_v2 = vadd.f32 %v1709_v22, %v286_v28 }
  0x4d   : > { %916 = vmatmul.bf16.gmra.mxu2 %v382_v20  ;;  %v332_v20 = vadd.f32 %v1709_v22, %v296_v17 }
  0x4e   : > { %v354_v36 = vmax.f32 %v322_v2, 0.0  ;;  %v298_v2 = vmul.f32 %v1687_v14, %v262_v29 }
  0x4f   : > { %v364_v24 = vmax.f32 %v332_v20, 0.0 }
  0x50   : > { %1546 = vmatpush.bf16.msra.mxu3 %v1638_v5  ;;  %v383_v40 = vpack.c.bf16 %v355_v37, %v354_v36  ;;  %v252_v5 = vld [vmem:[%s1666_s21 + $0x40] sm:$0xff]  ;;  %v720_v36 = vlaneseq  ;;  %v334_v37 = vadd.f32 %v1709_v22, %v298_v2 }
  0x51   : > { %v388_v26 = vpack.c.bf16 %v365_v25, %v364_v24  ;;  %v266_v25 = vld [vmem:[%s1666_s21 + $0xb0] sm:$0xff] }
  0x54   : > { %1547 = vmatpush.bf16.msra.mxu3 %v1655_v8  ;;  %v288_v8 = vmul.f32 %v1687_v14, %v252_v5  ;;  %v366_v5 = vmax.f32 %v334_v37, 0.0  ;;  %v302_v37 = vmul.f32 %v1687_v14, %v266_v25 }
  0x58   : > { %1548 = vmatpush.bf16.msra.mxu3 %v1678_v11  ;;  %v324_v11 = vadd.f32 %v1709_v22, %v288_v8 }
  0x5a   : > { %v356_v47 = vmax.f32 %v324_v11, 0.0 }
  0x5b   : > { %500 = vmatmul.bf16.gmra.mxu0 %v383_v40  ;;  %560 = vmatmul.bf16.gmra.mxu3 %v1817_v42 }
  0x5c   : > { %1549 = vmatpush.bf16.msra.mxu3 %v1702_v19  ;;  %654 = vmatmul.bf16.gmra.mxu1 %v383_v40  ;;  %v357_v19 = vmax.f32 %v325_v46, 0.0 }
  0x5d   : > { %921 = vmatmul.bf16.gmra.mxu2 %v383_v40 }
  0x5e   : > { %v384_v48 = vpack.c.bf16 %v357_v19, %v356_v47  ;;  %v389_v19 = vpack.c.bf16 %v367_v44, %v366_v5 }
  0x60   : > { %1550 = vmatpush.bf16.msra.mxu3 %v1726_v27  ;;  %v290_v27 = vmul.f32 %v1687_v14, %v254_v49 }
  0x64   : > { %1551 = vmatpush.bf16.msra.mxu3 %v1745_v34  ;;  %v326_v34 = vadd.f32 %v1709_v22, %v290_v27  ;;  %v265_v27 = vld [vmem:[%s1666_s21 + $0xa8] sm:$0xff] }
  0x65   : > { %v301_v56 = vmul.f32 %v1687_v14, %v265_v27 }
  0x66   : > { %v358_v53 = vmax.f32 %v326_v34, 0.0 }
  0x68   : > { %1552 = vmatpush.bf16.msra.mxu3 %v1758_v41  ;;  %v359_v41 = vmax.f32 %v327_v52, 0.0 }
  0x6a   : > { %v385_v54 = vpack.c.bf16 %v359_v41, %v358_v53 }
  0x6b   : > { %505 = vmatmul.bf16.gmra.mxu0 %v384_v48  ;;  %699 = vmatmul.bf16.vlgmr.msrb.gmra.mxu3 %v1760_v43 }
  0x6c   : > { %659 = vmatmul.bf16.gmra.mxu1 %v384_v48 }
  0x6d   : > { %926 = vmatmul.bf16.gmra.mxu2 %v384_v48 }
  0x7b   : > { %510 = vmatmul.bf16.gmra.mxu0 %v385_v54  ;;  %704 = vmatmul.bf16.gmra.mxu3 %v1780_v61 }
  0x7c   : > { %664 = vmatmul.bf16.gmra.mxu1 %v385_v54 }
  0x7d   : > { %931 = vmatmul.bf16.gmra.mxu2 %v385_v54 }
  0x8b   : > { %515 = vmatmul.bf16.gmra.mxu0 %v386_v0  ;;  %709 = vmatmul.bf16.gmra.mxu3 %v1798_v21 }
  0x8c   : > { %669 = vmatmul.bf16.gmra.mxu1 %v386_v0 }
  0x8d   : > { %936 = vmatmul.bf16.gmra.mxu2 %v386_v0  ;;  %v337_v0 = vadd.f32 %v1709_v22, %v301_v56 }
  0x8f   : > { %v369_v12 = vmax.f32 %v337_v0, 0.0 }
  0x91   : > { %v390_v23 = vpack.c.bf16 %v369_v12, %v368_v10 }
  0x9b   : > { %520 = vmatmul.bf16.gmra.mxu0 %v387_v13  ;;  %714 = vmatmul.bf16.gmra.mxu3 %v1817_v42 }
  0x9c   : > { %674 = vmatmul.bf16.gmra.mxu1 %v387_v13 }
  0x9d   : > { %941 = vmatmul.bf16.gmra.mxu2 %v387_v13 }
  0xa8   : > { %v1858_v28 = vpop.f32.mrf.mxu0 }
  0xa9   : > { %v1862_v31 = vpop.f32.mrf.mxu1  ;;  %v753_v48 = vrot.slane %v1858_v28, 7 }
  0xab   : > { %525 = vmatmul.bf16.gmra.mxu0 %v388_v26  ;;  %966 = vmatmul.bf16.vlgmr.msra.gmra.mxu3 %v1760_v43  ;;  %v1875_v43 = vshrl.u32 %v720_v36, 7 }
  0xac   : > { %679 = vmatmul.bf16.gmra.mxu1 %v388_v26 }
  0xad   : > { %946 = vmatmul.bf16.gmra.mxu2 %v388_v26  ;;  %vm785_vm0 = vcmp.lt.s32.totalorder %v1875_v43, 1  ;;  %vm1035_vm1 = vcmp.lt.s32.totalorder %v1875_v43, 7  ;;  %v267_v26 = vld [vmem:[%s1666_s21 + $0xb8] sm:$0xff]  ;;  %vm737_vm2 = vcmp.eq.s32.totalorder %v1875_v43, 0 }
  0xae   : > { %v1867_v33 = vpop.f32.mrf.mxu3  ;;  %v303_v38 = vmul.f32 %v1687_v14, %v267_v26 }
  0xaf   : > { %v777_v8 = vrot.slane %v1867_v33, 7 }
  0xb0   : > { %v1869_v35 = vpop.f32.mrf.mxu2  ;;  %v488_v39 = vpop.f32.mrf.mxu0 }
  0xb1   : > { %v1873_v40 = vpop.f32.mrf.mxu1  ;;  %v754_v45 = vrot.slane %v488_v39, 7 }
  0xb2   : > { %v1004_v52 = vrot.slane %v1873_v40, 1 }
  0xb3   : > { %v816_v53 = vsel %vm785_vm0, %v753_v48, %v754_v45 }
  0xb6   : > { %v548_v11 = vpop.f32.mrf.mxu3 }
  0xb7   : > { %v778_v46 = vrot.slane %v548_v11, 7 }
  0xb8   : > { %v909_v47 = vpop.f32.mrf.mxu2  ;;  %v491_v49 = vpop.f32.mrf.mxu0 }
  0xb9   : > { %v645_v51 = vpop.f32.mrf.mxu1  ;;  %v1886_v34 = vsel %vm785_vm0, %v777_v8, %v778_v46  ;;  %v910_v54 = vadd.f32 %v909_v47, %v816_v53  ;;  %v339_v47 = vadd.f32 %v1709_v22, %v303_v38 }
  0xba   : > { %v1005_v41 = vrot.slane %v645_v51, 1 }
  0xbb   : > { %530 = vmatmul.bf16.gmra.mxu0 %v389_v19  ;;  %971 = vmatmul.bf16.gmra.mxu3 %v1780_v61  ;;  %v755_v61 = vrot.slane %v491_v49, 7 }
  0xbc   : > { %v1065_v57 = vsel %vm1035_vm1, %v1004_v52, %v1005_v41  ;;  %684 = vmatmul.bf16.gmra.mxu1 %v389_v19 }
  0xbd   : > { %951 = vmatmul.bf16.gmra.mxu2 %v389_v19  ;;  %v1908_v58 = vadd.f32 %v1065_v57, %v910_v54  ;;  %v815_v6 = vsel %vm785_vm0, %v754_v45, %v755_v61 }
  0xbe   : > { %v551_v59 = vpop.f32.mrf.mxu3 }
  0xbf   : > { %1133 = vst [vmem:[%s1902_s12 + $0x8] sm:$0xff] %v1908_v58  ;;  %v779_v60 = vrot.slane %v551_v59, 7 }
  0xc0   : > { %v912_v62 = vpop.f32.mrf.mxu2  ;;  %v493_v1 = vpop.f32.mrf.mxu0 }
  0xc1   : > { %v647_v3 = vpop.f32.mrf.mxu1  ;;  %v1916_v4 = vsel %vm785_vm0, %v778_v46, %v779_v60  ;;  %v913_v9 = vadd.f32 %v912_v62, %v815_v6  ;;  %v756_v16 = vrot.slane %v493_v1, 7 }
  0xc2   : > { %v1006_v7 = vrot.slane %v647_v3, 1 }
  0xc3   : > { %v814_v2 = vsel %vm785_vm0, %v755_v61, %v756_v16 }
  0xc4   : > { %v1064_v13 = vsel %vm1035_vm1, %v1005_v41, %v1006_v7  ;;  %v371_v41 = vmax.f32 %v339_v47, 0.0 }
  0xc5   : > { %v1922_v15 = vadd.f32 %v1064_v13, %v913_v9 }
  0xc6   : > { %v553_v17 = vpop.f32.mrf.mxu3 }
  0xc7   : > { %1134 = vst [vmem:[%s1902_s12 + $0x10] sm:$0xff] %v1922_v15  ;;  %v780_v18 = vrot.slane %v553_v17, 7 }
  0xc8   : > { %v914_v20 = vpop.f32.mrf.mxu2  ;;  %v496_v24 = vpop.f32.mrf.mxu0 }
  0xc9   : > { %v650_v29 = vpop.f32.mrf.mxu1  ;;  %v1930_v30 = vsel %vm785_vm0, %v779_v60, %v780_v18  ;;  %v915_v36 = vadd.f32 %v914_v20, %v814_v2  ;;  %v757_v44 = vrot.slane %v496_v24, 7 }
  0xca   : > { %v1007_v32 = vrot.slane %v650_v29, 1 }
  0xcb   : > { %535 = vmatmul.bf16.gmra.mxu0 %v390_v23  ;;  %976 = vmatmul.bf16.gmra.mxu3 %v1798_v21  ;;  %v338_v21 = vadd.f32 %v1709_v22, %v302_v37  ;;  %v813_v50 = vsel %vm785_vm0, %v756_v16, %v757_v44 }
  0xcc   : > { %v1063_v39 = vsel %vm1035_vm1, %v1006_v7, %v1007_v32  ;;  %689 = vmatmul.bf16.gmra.mxu1 %v390_v23 }
  0xcd   : > { %956 = vmatmul.bf16.gmra.mxu2 %v390_v23  ;;  %v1939_v5 = vadd.f32 %v1063_v39, %v915_v36  ;;  %v370_v53 = vmax.f32 %v338_v21, 0.0 }
  0xce   : > { %v556_v45 = vpop.f32.mrf.mxu3 }
  0xcf   : > { %1135 = vst [vmem:[%s1902_s12 + $0x18] sm:$0xff] %v1939_v5  ;;  %v781_v11 = vrot.slane %v556_v45, 7  ;;  %v391_v59 = vpack.c.bf16 %v371_v41, %v370_v53 }
  0xd0   : > { %v917_v46 = vpop.f32.mrf.mxu2  ;;  %v498_v19 = vpop.f32.mrf.mxu0 }
  0xd1   : > { %v652_v14 = vpop.f32.mrf.mxu1  ;;  %v1947_v49 = vsel %vm785_vm0, %v780_v18, %v781_v11  ;;  %v918_v51 = vadd.f32 %v917_v46, %v813_v50  ;;  %v758_v56 = vrot.slane %v498_v19, 7 }
  0xd2   : > { %v1008_v27 = vrot.slane %v652_v14, 1 }
  0xd3   : > { %v812_v0 = vsel %vm785_vm0, %v757_v44, %v758_v56  ;;  %v1003_v44 = vrot.slane %v1862_v31, 1 }
  0xd4   : > { %v1062_v54 = vsel %vm1035_vm1, %v1007_v32, %v1008_v27 }
  0xd5   : > { %v1953_v55 = vadd.f32 %v1062_v54, %v918_v51  ;;  %v1203_v51 = vmul.f32 %v1908_v58, %v1908_v58 }
  0xd6   : > { %v558_v22 = vpop.f32.mrf.mxu3 }
  0xd7   : > { %1136 = vst [vmem:[%s1902_s12 + $0x20] sm:$0xff] %v1953_v55  ;;  %v782_v57 = vrot.slane %v558_v22, 7 }
  0xd8   : > { %v919_v61 = vpop.f32.mrf.mxu2  ;;  %v501_v60 = vpop.f32.mrf.mxu0 }
  0xd9   : > { %v655_v62 = vpop.f32.mrf.mxu1  ;;  %v1959_v63 = vsel %vm785_vm0, %v781_v11, %v782_v57  ;;  %v920_v3 = vadd.f32 %v919_v61, %v812_v0  ;;  %v759_v9 = vrot.slane %v501_v60, 7 }
  0xda   : > { %v1009_v1 = vrot.slane %v655_v62, 1 }
  0xdb   : > { %540 = vmatmul.bf16.gmra.mxu0 %v391_v59  ;;  %981 = vmatmul.bf16.gmra.mxu3 %v1817_v42  ;;  %v811_v42 = vsel %vm785_vm0, %v758_v56, %v759_v9 }
  0xdc   : > { %v1061_v6 = vsel %vm1035_vm1, %v1008_v27, %v1009_v1  ;;  %694 = vmatmul.bf16.gmra.mxu1 %v391_v59 }
  0xdd   : > { %961 = vmatmul.bf16.gmra.mxu2 %v391_v59  ;;  %v1966_v7 = vadd.f32 %v1061_v6, %v920_v3  ;;  %v1205_v59 = vmul.f32 %v1939_v5, %v1939_v5 }
  0xde   : > { %v561_v10 = vpop.f32.mrf.mxu3 }
  0xdf   : > { %1137 = vst [vmem:[%s1902_s12 + $0x28] sm:$0xff] %v1966_v7  ;;  %v783_v12 = vrot.slane %v561_v10, 7 }
  0xe0   : > { %v922_v13 = vpop.f32.mrf.mxu2  ;;  %v503_v16 = vpop.f32.mrf.mxu0 }
  0xe1   : > { %v657_v17 = vpop.f32.mrf.mxu1  ;;  %v1972_v18 = vsel %vm785_vm0, %v782_v57, %v783_v12  ;;  %v923_v23 = vadd.f32 %v922_v13, %v811_v42  ;;  %v760_v26 = vrot.slane %v503_v16, 7 }
  0xe2   : > { %v1010_v20 = vrot.slane %v657_v17, 1 }
  0xe3   : > { %v810_v45 = vsel %vm785_vm0, %v759_v9, %v760_v26 }
  0xe4   : > { %v1060_v24 = vsel %vm1035_vm1, %v1009_v1, %v1010_v20  ;;  %v1206_v1 = vmul.f32 %v1953_v55, %v1953_v55 }
  0xe5   : > { %v1106_v25 = vadd.f32 %v1060_v24, %v923_v23 }
  0xe6   : > { %v563_v29 = vpop.f32.mrf.mxu3 }
  0xe7   : > { %1138 = vst [vmem:[%s1902_s12 + $0x30] sm:$0xff] %v1106_v25  ;;  %v784_v2 = vrot.slane %v563_v29, 7  ;;  %v1208_v42 = vmul.f32 %v1106_v25, %v1106_v25 }
  0xe8   : > { %v924_v32 = vpop.f32.mrf.mxu2  ;;  %v506_v36 = vpop.f32.mrf.mxu0 }
  0xe9   : > { %v660_v37 = vpop.f32.mrf.mxu1  ;;  %v817_v38 = vsel %vm785_vm0, %v784_v2, %v753_v48  ;;  %v1986_v39 = vsel %vm785_vm0, %v783_v12, %v784_v2  ;;  %v925_v21 = vadd.f32 %v924_v32, %v810_v45  ;;  %v1066_v48 = vsel %vm1035_vm1, %v1003_v44, %v1004_v52 }
  0xea   : > { %v1011_v11 = vrot.slane %v660_v37, 1  ;;  %v818_v46 = vsel %vm737_vm2, 0.0, %v817_v38  ;;  %v761_v50 = vrot.slane %v506_v36, 7  ;;  %v1204_v52 = vmul.f32 %v1922_v15, %v1922_v15 }
  0xeb   : > { %v908_v28 = vadd.f32 %v1869_v35, %v818_v46  ;;  %v1207_v12 = vmul.f32 %v1966_v7, %v1966_v7 }
  0xec   : > { %v1059_v47 = vsel %vm1035_vm1, %v1010_v20, %v1011_v11  ;;  %v809_v57 = vsel %vm785_vm0, %v760_v26, %v761_v50 }
  0xed   : > { %v1107_v19 = vadd.f32 %v1059_v47, %v925_v21  ;;  %v1100_v14 = vadd.f32 %v1066_v48, %v908_v28 }
  0xee   : > { %v2002_v27 = vpop.f32.mrf.mxu3 }
  0xef   : > { %1139 = vst [vmem:[%s1902_s12 + $0x38] sm:$0xff] %v1107_v19  ;;  %v1164_v40 = vadd.f32 %v1908_v58, %v1100_v14  ;;  %v1202_v53 = vmul.f32 %v1100_v14, %v1100_v14  ;;  %v1209_v29 = vmul.f32 %v1107_v19, %v1107_v19 }
  0xf0   : > { %v927_v35 = vpop.f32.mrf.mxu2  ;;  %v508_v41 = vpop.f32.mrf.mxu0  ;;  %1132 = vst [vmem:[%s1902_s12] sm:$0xff] %v1100_v14 }
  0xf1   : > { %v662_v54 = vpop.f32.mrf.mxu1  ;;  %v1165_v56 = vadd.f32 %v1164_v40, %v1922_v15  ;;  %v1234_v22 = vadd.f32 %v1203_v51, %v1202_v53  ;;  %v928_v60 = vadd.f32 %v927_v35, %v809_v57  ;;  %v762_v9 = vrot.slane %v508_v41, 7 }
  0xf2   : > { %v1012_v61 = vrot.slane %v662_v54, 1 }
  0xf3   : > { %v1166_v58 = vadd.f32 %v1165_v56, %v1939_v5  ;;  %v1235_v62 = vadd.f32 %v1234_v22, %v1204_v52 }
  0xf4   : > { %v1058_v0 = vsel %vm1035_vm1, %v1011_v11, %v1012_v61 }
  0xf5   : > { %v1108_v15 = vadd.f32 %v1058_v0, %v928_v60  ;;  %v1167_v3 = vadd.f32 %v1166_v58, %v1953_v55  ;;  %v1236_v6 = vadd.f32 %v1235_v62, %v1205_v59  ;;  %v808_v55 = vsel %vm785_vm0, %v761_v50, %v762_v9 }
  0xf6   : > { %v2022_v10 = vpop.f32.mrf.mxu3 }
  0xf7   : > { %1140 = vst [vmem:[%s1902_s12 + $0x40] sm:$0xff] %v1108_v15  ;;  %v1168_v5 = vadd.f32 %v1167_v3, %v1966_v7  ;;  %v1237_v16 = vadd.f32 %v1236_v6, %v1206_v1  ;;  %v1210_v38 = vmul.f32 %v1108_v15, %v1108_v15 }
  0xf8   : > { %v929_v13 = vpop.f32.mrf.mxu2  ;;  %v511_v17 = vpop.f32.mrf.mxu0 }
  0xf9   : > { %v665_v20 = vpop.f32.mrf.mxu1  ;;  %v1169_v23 = vadd.f32 %v1168_v5, %v1106_v25  ;;  %v1238_v24 = vadd.f32 %v1237_v16, %v1207_v12  ;;  %v930_v2 = vadd.f32 %v929_v13, %v808_v55  ;;  %v763_v46 = vrot.slane %v511_v17, 7 }
  0xfa   : > { %v1013_v26 = vrot.slane %v665_v20, 1 }
  0xfb   : > { %v1170_v32 = vadd.f32 %v1169_v23, %v1107_v19  ;;  %v1239_v36 = vadd.f32 %v1238_v24, %v1208_v42  ;;  %v807_v51 = vsel %vm785_vm0, %v762_v9, %v763_v46 }
  0xfc   : > { %v1057_v37 = vsel %vm1035_vm1, %v1012_v61, %v1013_v26 }
  0xfd   : > { %v1109_v7 = vadd.f32 %v1057_v37, %v930_v2  ;;  %v1171_v45 = vadd.f32 %v1170_v32, %v1108_v15  ;;  %v1240_v11 = vadd.f32 %v1239_v36, %v1209_v29 }
  0xfe   : > { %v2032_v21 = vpop.f32.mrf.mxu3 }
  0xff   : > { %v1211_v25 = vmul.f32 %v1109_v7, %v1109_v7  ;;  %1141 = vst [vmem:[%s1902_s12 + $0x48] sm:$0xff] %v1109_v7  ;;  %v1241_v48 = vadd.f32 %v1240_v11, %v1210_v38  ;;  %v1172_v47 = vadd.f32 %v1171_v45, %v1109_v7 }
 0x100   : > { %v932_v28 = vpop.f32.mrf.mxu2  ;;  %v513_v14 = vpop.f32.mrf.mxu0 }
 0x101   : > { %v667_v50 = vpop.f32.mrf.mxu1  ;;  %v1242_v19 = vadd.f32 %v1241_v48, %v1211_v25  ;;  %v933_v40 = vadd.f32 %v932_v28, %v807_v51  ;;  %v764_v52 = vrot.slane %v513_v14, 7 }
 0x102   : > { %v1014_v35 = vrot.slane %v667_v50, 1 }
 0x103   : > { %v806_v58 = vsel %vm785_vm0, %v763_v46, %v764_v52 }
 0x104   : > { %v1056_v53 = vsel %vm1035_vm1, %v1013_v26, %v1014_v35 }
 0x105   : > { %v1110_v41 = vadd.f32 %v1056_v53, %v933_v40 }
 0x106   : > { %v2039_v54 = vpop.f32.mrf.mxu3 }
 0x107   : > { %v1212_v56 = vmul.f32 %v1110_v41, %v1110_v41  ;;  %1142 = vst [vmem:[%s1902_s12 + $0x50] sm:$0xff] %v1110_v41  ;;  %v1173_v57 = vadd.f32 %v1172_v47, %v1110_v41 }
 0x108   : > { %v934_v22 = vpop.f32.mrf.mxu2  ;;  %v516_v61 = vpop.f32.mrf.mxu0 }
 0x109   : > { %v670_v59 = vpop.f32.mrf.mxu1  ;;  %v1243_v60 = vadd.f32 %v1242_v19, %v1212_v56  ;;  %v935_v0 = vadd.f32 %v934_v22, %v806_v58  ;;  %v765_v3 = vrot.slane %v516_v61, 7  ;;  %v2081_v61 = vadd.s32 120, %v1875_v43 }
 0x10a   : > { %v1015_v62 = vrot.slane %v670_v59, 1 }
 0x10b   : > { %v805_v42 = vsel %vm785_vm0, %v764_v52, %v765_v3  ;;  %vm1002_vm3 = vcmp.eq.s32.totalorder %v2081_v61, 127 }
 0x10c   : > { %v1055_v1 = vsel %vm1035_vm1, %v1014_v35, %v1015_v62 }
 0x10d   : > { %v1111_v15 = vadd.f32 %v1055_v1, %v935_v0 }
 0x10e   : > { %v2046_v6 = vpop.f32.mrf.mxu3 }
 0x10f   : > { %v1213_v9 = vmul.f32 %v1111_v15, %v1111_v15  ;;  %1143 = vst [vmem:[%s1902_s12 + $0x58] sm:$0xff] %v1111_v15  ;;  %v1174_v13 = vadd.f32 %v1173_v57, %v1111_v15 }
 0x110   : > { %v937_v12 = vpop.f32.mrf.mxu2  ;;  %v518_v5 = vpop.f32.mrf.mxu0 }
 0x111   : > { %v672_v16 = vpop.f32.mrf.mxu1  ;;  %v1244_v17 = vadd.f32 %v1243_v60, %v1213_v9  ;;  %v938_v23 = vadd.f32 %v937_v12, %v805_v42  ;;  %v766_v26 = vrot.slane %v518_v5, 7 }
 0x112   : > { %v1016_v20 = vrot.slane %v672_v16, 1 }
 0x113   : > { %v804_v45 = vsel %vm785_vm0, %v765_v3, %v766_v26 }
 0x114   : > { %v1054_v24 = vsel %vm1035_vm1, %v1015_v62, %v1016_v20 }
 0x115   : > { %v1112_v55 = vadd.f32 %v1054_v24, %v938_v23  ;;  %v1028_v23 = vrot.slane %v2022_v10, 1  ;;  %v1029_v24 = vrot.slane %v2032_v21, 1 }
 0x116   : > { %v2053_v29 = vpop.f32.mrf.mxu3 }
 0x117   : > { %v1214_v2 = vmul.f32 %v1112_v55, %v1112_v55  ;;  %1144 = vst [vmem:[%s1902_s12 + $0x60] sm:$0xff] %v1112_v55  ;;  %v2056_v36 = vadd.f32 %v1174_v13, %v1112_v55 }
 0x118   : > { %v939_v32 = vpop.f32.mrf.mxu2  ;;  %v521_v37 = vpop.f32.mrf.mxu0 }
 0x119   : > { %v675_v38 = vpop.f32.mrf.mxu1  ;;  %v2058_v7 = vadd.f32 %v1244_v17, %v1214_v2  ;;  %v940_v46 = vadd.f32 %v939_v32, %v804_v45  ;;  %v767_v48 = vrot.slane %v521_v37, 7  ;;  %v1041_v45 = vsel %vm1035_vm1, %v1028_v23, %v1029_v24 }
 0x11a   : > { %v1017_v11 = vrot.slane %v675_v38, 1 }
 0x11b   : > { %v803_v51 = vsel %vm785_vm0, %v766_v26, %v767_v48 }
 0x11c   : > { %v1053_v25 = vsel %vm1035_vm1, %v1016_v20, %v1017_v11 }
 0x11d   : > { %v2064_v28 = vadd.f32 %v1053_v25, %v940_v46 }
 0x11e   : > { %v2066_v47 = vpop.f32.mrf.mxu3 }
 0x11f   : > { %1145 = vst [vmem:[%s1902_s12 + $0x68] sm:$0xff] %v2064_v28 }
 0x120   : > { %v942_v14 = vpop.f32.mrf.mxu2  ;;  %v523_v50 = vpop.f32.mrf.mxu0 }
 0x121   : > { %v677_v19 = vpop.f32.mrf.mxu1  ;;  %v943_v40 = vadd.f32 %v942_v14, %v803_v51  ;;  %v768_v56 = vrot.slane %v523_v50, 7  ;;  %v1030_v50 = vrot.slane %v2039_v54, 1 }
 0x122   : > { %v1018_v35 = vrot.slane %v677_v19, 1 }
 0x123   : > { %v802_v58 = vsel %vm785_vm0, %v767_v48, %v768_v56 }
 0x124   : > { %v1052_v53 = vsel %vm1035_vm1, %v1017_v11, %v1018_v35 }
 0x125   : > { %v2074_v41 = vadd.f32 %v1052_v53, %v943_v40 }
 0x126   : > { %v2076_v52 = vpop.f32.mrf.mxu3 }
 0x127   : > { %1146 = vst [vmem:[%s1902_s12 + $0x70] sm:$0xff] %v2074_v41 }
 0x128   : > { %v944_v22 = vpop.f32.mrf.mxu2  ;;  %v526_v57 = vpop.f32.mrf.mxu0 }
 0x129   : > { %v680_v59 = vpop.f32.mrf.mxu1  ;;  %v769_v62 = vrot.slane %v526_v57, 7  ;;  %v945_v0 = vadd.f32 %v944_v22, %v802_v58 }
 0x12a   : > { %v1019_v60 = vrot.slane %v680_v59, 1 }
 0x12b   : > { %v801_v12 = vsel %vm785_vm0, %v768_v56, %v769_v62  ;;  %v1040_v56 = vsel %vm1035_vm1, %v1029_v24, %v1030_v50 }
 0x12c   : > { %v1051_v1 = vsel %vm1035_vm1, %v1018_v35, %v1019_v60  ;;  %v834_v17 = vsel %vm737_vm2, 0.0, %v801_v12 }
 0x12d   : > { %v1083_v15 = vsel %vm1002_vm3, 0.0, %v1051_v1 }
 0x12e   : > { %v2090_v3 = vpop.f32.mrf.mxu3  ;;  %v2092_v9 = vadd.f32 %v1083_v15, %v945_v0 }
 0x130   : > { %v947_v13 = vpop.f32.mrf.mxu2  ;;  %v528_v5 = vpop.f32.mrf.mxu0  ;;  %1147 = vst [vmem:[%s1902_s12 + $0x78] sm:$0xff] %v2092_v9 }
 0x131   : > { %v682_v16 = vpop.f32.mrf.mxu1  ;;  %v948_v20 = vadd.f32 %v947_v13, %v834_v17  ;;  %v770_v2 = vrot.slane %v528_v5, 7 }
 0x132   : > { %v1020_v42 = vrot.slane %v682_v16, 1 }
 0x133   : > { %v800_v25 = vsel %vm785_vm0, %v769_v62, %v770_v2  ;;  %v1031_v62 = vrot.slane %v2046_v6, 1 }
 0x134   : > { %v1050_v55 = vsel %vm1035_vm1, %v1019_v60, %v1020_v42 }
 0x135   : > { %v2104_v26 = vadd.f32 %v1050_v55, %v948_v20  ;;  %v1039_v5 = vsel %vm1035_vm1, %v1030_v50, %v1031_v62  ;;  %v1032_v55 = vrot.slane %v2053_v29, 1 }
 0x136   : > { %v969_v32 = vpop.f32.mrf.mxu3 }
 0x137   : > { %1148 = vst [vmem:[%s1902_s12 + $0x80] sm:$0xff] %v2104_v26  ;;  %v970_v38 = vadd.f32 %v969_v32, %v1886_v34 }
 0x138   : > { %v949_v37 = vpop.f32.mrf.mxu2  ;;  %v531_v11 = vpop.f32.mrf.mxu0 }
 0x139   : > { %v2113_v21 = vadd.f32 %v1041_v45, %v970_v38  ;;  %v685_v46 = vpop.f32.mrf.mxu1  ;;  %v950_v14 = vadd.f32 %v949_v37, %v800_v25  ;;  %v771_v51 = vrot.slane %v531_v11, 7  ;;  %v1038_v11 = vsel %vm1035_vm1, %v1031_v62, %v1032_v55 }
 0x13a   : > { %v1021_v48 = vrot.slane %v685_v46, 1 }
 0x13b   : > { %1157 = vst [vmem:[%s1902_s12 + $0xc8] sm:$0xff] %v2113_v21  ;;  %v799_v59 = vsel %vm785_vm0, %v770_v2, %v771_v51 }
 0x13c   : > { %v1049_v34 = vsel %vm1035_vm1, %v1020_v42, %v1021_v48 }
 0x13d   : > { %v2122_v19 = vadd.f32 %v1049_v34, %v950_v14  ;;  %v1033_v34 = vrot.slane %v2066_v47, 1 }
 0x13e   : > { %v972_v35 = vpop.f32.mrf.mxu3 }
 0x13f   : > { %1149 = vst [vmem:[%s1902_s12 + $0x88] sm:$0xff] %v2122_v19  ;;  %v973_v53 = vadd.f32 %v972_v35, %v1916_v4  ;;  %v1037_v47 = vsel %vm1035_vm1, %v1032_v55, %v1033_v34 }
 0x140   : > { %v952_v40 = vpop.f32.mrf.mxu2  ;;  %v533_v22 = vpop.f32.mrf.mxu0 }
 0x141   : > { %v2129_v57 = vadd.f32 %v1040_v56, %v973_v53  ;;  %v687_v54 = vpop.f32.mrf.mxu1  ;;  %v953_v58 = vadd.f32 %v952_v40, %v799_v59  ;;  %v772_v1 = vrot.slane %v533_v22, 7  ;;  %v1216_v56 = vmul.f32 %v2074_v41, %v2074_v41 }
 0x142   : > { %v1022_v60 = vrot.slane %v687_v54, 1 }
 0x143   : > { %1158 = vst [vmem:[%s1902_s12 + $0xd0] sm:$0xff] %v2129_v57  ;;  %v798_v42 = vsel %vm785_vm0, %v771_v51, %v772_v1  ;;  %v1215_v51 = vmul.f32 %v2064_v28, %v2064_v28  ;;  %v1228_v43 = vmul.f32 %v2129_v57, %v2129_v57 }
 0x144   : > { %v1048_v4 = vsel %vm1035_vm1, %v1021_v48, %v1022_v60 }
 0x145   : > { %v2138_v0 = vadd.f32 %v1048_v4, %v953_v58  ;;  %v1217_v4 = vmul.f32 %v2092_v9, %v2092_v9 }
 0x146   : > { %v974_v15 = vpop.f32.mrf.mxu3 }
 0x147   : > { %1150 = vst [vmem:[%s1902_s12 + $0x90] sm:$0xff] %v2138_v0  ;;  %v975_v13 = vadd.f32 %v974_v15, %v1930_v30 }
 0x148   : > { %v954_v12 = vpop.f32.mrf.mxu2  ;;  %v536_v16 = vpop.f32.mrf.mxu0 }
 0x149   : > { %v2145_v17 = vadd.f32 %v1039_v5, %v975_v13  ;;  %v690_v6 = vpop.f32.mrf.mxu1  ;;  %v955_v24 = vadd.f32 %v954_v12, %v798_v42  ;;  %v773_v32 = vrot.slane %v536_v16, 7  ;;  %v1218_v13 = vmul.f32 %v2104_v26, %v2104_v26 }
 0x14a   : > { %v1023_v20 = vrot.slane %v690_v6, 1 }
 0x14b   : > { %1159 = vst [vmem:[%s1902_s12 + $0xd8] sm:$0xff] %v2145_v17  ;;  %v797_v48 = vsel %vm785_vm0, %v772_v1, %v773_v32  ;;  %v1246_v1 = vadd.f32 %v2058_v7, %v1215_v51  ;;  %v1219_v7 = vmul.f32 %v2122_v19, %v2122_v19 }
 0x14c   : > { %v1047_v30 = vsel %vm1035_vm1, %v1022_v60, %v1023_v20  ;;  %v1176_v60 = vadd.f32 %v2056_v36, %v2064_v28 }
 0x14d   : > { %v2154_v2 = vadd.f32 %v1047_v30, %v955_v24  ;;  %v1247_v36 = vadd.f32 %v1246_v1, %v1216_v56  ;;  %v1220_v30 = vmul.f32 %v2138_v0, %v2138_v0 }
 0x14e   : > { %v977_v37 = vpop.f32.mrf.mxu3 }
 0x14f   : > { %1151 = vst [vmem:[%s1902_s12 + $0x98] sm:$0xff] %v2154_v2  ;;  %v978_v45 = vadd.f32 %v977_v37, %v1947_v49  ;;  %v1248_v42 = vadd.f32 %v1247_v36, %v1217_v4 }
 0x150   : > { %v957_v38 = vpop.f32.mrf.mxu2  ;;  %v538_v46 = vpop.f32.mrf.mxu0 }
 0x151   : > { %v2161_v25 = vadd.f32 %v1038_v11, %v978_v45  ;;  %v692_v29 = vpop.f32.mrf.mxu1  ;;  %v958_v50 = vadd.f32 %v957_v38, %v797_v48  ;;  %v774_v40 = vrot.slane %v538_v46, 7 }
 0x152   : > { %v1024_v14 = vrot.slane %v692_v29, 1 }
 0x153   : > { %1160 = vst [vmem:[%s1902_s12 + $0xe0] sm:$0xff] %v2161_v25  ;;  %v796_v15 = vsel %vm785_vm0, %v773_v32, %v774_v40 }
 0x154   : > { %v1046_v49 = vsel %vm1035_vm1, %v1023_v20, %v1024_v14  ;;  %v1034_v20 = vrot.slane %v2076_v52, 1  ;;  %v1027_v52 = vrot.slane %v2002_v27, 1 }
 0x155   : > { %v1120_v35 = vadd.f32 %v1046_v49, %v958_v50 }
 0x156   : > { %v979_v53 = vpop.f32.mrf.mxu3  ;;  %v1036_v38 = vsel %vm1035_vm1, %v1033_v34, %v1034_v20  ;;  %v1042_v33 = vsel %vm1035_vm1, %v1027_v52, %v1028_v23 }
 0x157   : > { %1152 = vst [vmem:[%s1902_s12 + $0xa0] sm:$0xff] %v1120_v35  ;;  %v980_v54 = vadd.f32 %v979_v53, %v1959_v63  ;;  %v1177_v63 = vadd.f32 %v1176_v60, %v2074_v41  ;;  %v1222_v53 = vmul.f32 %v1120_v35, %v1120_v35 }
 0x158   : > { %v959_v22 = vpop.f32.mrf.mxu2  ;;  %v541_v59 = vpop.f32.mrf.mxu0 }
 0x159   : > { %v2180_v58 = vadd.f32 %v1037_v47, %v980_v54  ;;  %v695_v62 = vpop.f32.mrf.mxu1  ;;  %v960_v5 = vadd.f32 %v959_v22, %v796_v15  ;;  %v1178_v16 = vadd.f32 %v1177_v63, %v2092_v9  ;;  %v775_v41 = vrot.slane %v541_v59, 7 }
 0x15a   : > { %v1025_v12 = vrot.slane %v695_v62, 1  ;;  %v1249_v9 = vadd.f32 %v1248_v42, %v1218_v13 }
 0x15b   : > { %1161 = vst [vmem:[%s1902_s12 + $0xe8] sm:$0xff] %v2180_v58  ;;  %v1179_v55 = vadd.f32 %v1178_v16, %v2104_v26  ;;  %v1227_v16 = vmul.f32 %v2113_v21, %v2113_v21 }
 0x15c   : > { %v1045_v28 = vsel %vm1035_vm1, %v1024_v14, %v1025_v12  ;;  %v1250_v48 = vadd.f32 %v1249_v9, %v1219_v7  ;;  %v1221_v14 = vmul.f32 %v2154_v2, %v2154_v2 }
 0x15d   : > { %v1121_v6 = vadd.f32 %v1045_v28, %v960_v5  ;;  %v1180_v11 = vadd.f32 %v1179_v55, %v2122_v19  ;;  %v1067_v19 = vsel %vm1035_vm1, %v1034_v20, %v1003_v44 }
 0x15e   : > { %v982_v24 = vpop.f32.mrf.mxu3  ;;  %v1251_v51 = vadd.f32 %v1250_v48, %v1220_v30  ;;  %v1099_v10 = vsel %vm1002_vm3, 0.0, %v1067_v19  ;;  %v1230_v30 = vmul.f32 %v2161_v25, %v2161_v25 }
 0x15f   : > { %1153 = vst [vmem:[%s1902_s12 + $0xa8] sm:$0xff] %v1121_v6  ;;  %v983_v37 = vadd.f32 %v982_v24, %v1972_v18  ;;  %v795_v18 = vsel %vm785_vm0, %v774_v40, %v775_v41  ;;  %v1181_v49 = vadd.f32 %v1180_v11, %v2138_v0  ;;  %v1223_v31 = vmul.f32 %v1121_v6, %v1121_v6 }
 0x160   : > { %v962_v32 = vpop.f32.mrf.mxu2  ;;  %v543_v45 = vpop.f32.mrf.mxu0  ;;  %v1252_v47 = vadd.f32 %v1251_v51, %v1221_v14 }
 0x161   : > { %v2207_v46 = vadd.f32 %v1036_v38, %v983_v37  ;;  %v776_v26 = vrot.slane %v543_v45, 7  ;;  %v697_v29 = vpop.f32.mrf.mxu1  ;;  %v963_v34 = vadd.f32 %v962_v32, %v795_v18  ;;  %v1182_v56 = vadd.f32 %v1181_v49, %v2154_v2 }
 0x162   : > { %v1026_v50 = vrot.slane %v697_v29, 1  ;;  %v1253_v4 = vadd.f32 %v1252_v47, %v1222_v53  ;;  %v1231_v37 = vmul.f32 %v2180_v58, %v2180_v58 }
 0x163   : > { %1162 = vst [vmem:[%s1902_s12 + $0xf0] sm:$0xff] %v2207_v46  ;;  %v793_v27 = vsel %vm785_vm0, %v776_v26, %v777_v8  ;;  %v1183_v44 = vadd.f32 %v1182_v56, %v1120_v35  ;;  %v1232_v38 = vmul.f32 %v2207_v46, %v2207_v46 }
 0x164   : > { %v968_v40 = vadd.f32 %v2090_v3, %v793_v27  ;;  %v1044_v0 = vsel %vm1035_vm1, %v1025_v12, %v1026_v50  ;;  %v794_v3 = vsel %vm785_vm0, %v775_v41, %v776_v26  ;;  %v1043_v35 = vsel %vm1035_vm1, %v1026_v50, %v1027_v52 }
 0x165   : > { %v1122_v8 = vadd.f32 %v1044_v0, %v963_v34  ;;  %v1184_v62 = vadd.f32 %v1183_v44, %v1121_v6  ;;  %v1254_v63 = vadd.f32 %v1253_v4, %v1223_v31  ;;  %v1229_v41 = vmul.f32 %v2145_v17, %v2145_v17 }
 0x166   : > { %v1124_v22 = vadd.f32 %v1042_v33, %v968_v40  ;;  %v984_v54 = vpop.f32.mrf.mxu3 }
 0x167   : > { %1154 = vst [vmem:[%s1902_s12 + $0xb0] sm:$0xff] %v1122_v8  ;;  %v985_v2 = vadd.f32 %v984_v54, %v1986_v39  ;;  %v1224_v23 = vmul.f32 %v1122_v8, %v1122_v8  ;;  %v1185_v12 = vadd.f32 %v1184_v62, %v1122_v8 }
 0x168   : > { %v964_v59 = vpop.f32.mrf.mxu2  ;;  %1156 = vst [vmem:[%s1902_s12 + $0xc0] sm:$0xff] %v1124_v22  ;;  %v1226_v36 = vmul.f32 %v1124_v22, %v1124_v22 }
 0x169   : > { %v965_v60 = vadd.f32 %v964_v59, %v794_v3  ;;  %v1131_v1 = vadd.f32 %v1099_v10, %v985_v2  ;;  %v1255_v39 = vadd.f32 %v1254_v63, %v1224_v23 }
 0x16b   : > { %v1123_v15 = vadd.f32 %v1043_v35, %v965_v60  ;;  %1163 = vst [vmem:[%s1902_s12 + $0xf8] sm:$0xff] %v1131_v1  ;;  %v1233_v52 = vmul.f32 %v1131_v1, %v1131_v1 }
 0x16d   : > { %1155 = vst [vmem:[%s1902_s12 + $0xb8] sm:$0xff] %v1123_v15  ;;  %v1225_v13 = vmul.f32 %v1123_v15, %v1123_v15  ;;  %v1186_v5 = vadd.f32 %v1185_v12, %v1123_v15 }
 0x16f   : > { %v1187_v61 = vadd.f32 %v1186_v5, %v1124_v22  ;;  %v1256_v28 = vadd.f32 %v1255_v39, %v1225_v13 }
 0x171   : > { %v1188_v7 = vadd.f32 %v1187_v61, %v2113_v21  ;;  %v1257_v6 = vadd.f32 %v1256_v28, %v1226_v36 }
 0x173   : > { %v1189_v42 = vadd.f32 %v1188_v7, %v2129_v57  ;;  %v1258_v20 = vadd.f32 %v1257_v6, %v1227_v16 }
 0x175   : > { %v1190_v24 = vadd.f32 %v1189_v42, %v2145_v17  ;;  %v1259_v55 = vadd.f32 %v1258_v20, %v1228_v43 }
 0x177   : > { %v1191_v21 = vadd.f32 %v1190_v24, %v2161_v25  ;;  %v1260_v32 = vadd.f32 %v1259_v55, %v1229_v41 }
 0x179   : > { %v1192_v9 = vadd.f32 %v1191_v21, %v2180_v58  ;;  %v1261_v57 = vadd.f32 %v1260_v32, %v1230_v30 }
 0x17b   : > { %v1193_v45 = vadd.f32 %v1192_v9, %v2207_v46  ;;  %v1262_v17 = vadd.f32 %v1261_v57, %v1231_v37 }
 0x17d   : > { %v1194_v11 = vadd.f32 %v1193_v45, %v1131_v1  ;;  %v1263_v26 = vadd.f32 %v1262_v17, %v1232_v38 }
 0x17f   : > { %v1195_v29 = vrot.slane %v1194_v11, 4  ;;  %v1264_v48 = vadd.f32 %v1263_v26, %v1233_v52 }
 0x181   : > { %v1196_v25 = vadd.f32 %v1195_v29, %v1194_v11  ;;  %v1265_v14 = vrot.slane %v1264_v48, 4 }
 0x183   : > { %v1197_v18 = vrot.slane %v1196_v25, 2  ;;  %v1266_v50 = vadd.f32 %v1265_v14, %v1264_v48 }
 0x185   : > { %v1198_v58 = vadd.f32 %v1197_v18, %v1196_v25  ;;  %v1267_v49 = vrot.slane %v1266_v50, 2 }
 0x187   : > { %v1199_v34 = vrot.slane %v1198_v58, 1  ;;  %v1268_v27 = vadd.f32 %v1267_v49, %v1266_v50 }
 0x189   : > { %v1200_v46 = vadd.f32 %v1199_v34, %v1198_v58  ;;  %v1269_v19 = vrot.slane %v1268_v27, 1 }
 0x18b   : > { %1201 = vst [vmem:[%s243_s13] sm:$0x1] %v1200_v46  ;;  %v1270_v51 = vadd.f32 %v1269_v19, %v1268_v27 }
 0x18d   : > { %1271 = vst [vmem:[%s243_s13 + $0x1] sm:$0x1] %v1270_v51 }
 0x18e PF: > { %s16_s18 = sadd.s32 1, %s1569_s18  }
 0x18f   : > { %p13_p5 = scmp.ge.s32.totalorder %s16_s18, 6  }
 0x191   :  { %15 = sbr.rel (!%p13_p5) target bundleno = 1 (0x1), region = 80 }

</bundles_post_ra>
